<compile_context>
chip_gen: v6e
topology: v6e:2x2x1
jax: 0.10.0
libtpu: 0.0.40
codegen_flags: <defaults>
</compile_context>

<pallas_src>
import functools

import jax
import jax.numpy as jnp
from jax.experimental import pallas as pl
from jax.experimental.pallas import tpu as pltpu


def _bilateral_kernel(pf_ref, kern_ref, x_ref, halo_ref, o_ref, *,
                      ksize, dilation, h_total, h_tile, halo, dyn):
    # pf_ref:   SMEM (C,)    f32  per-channel range params (already -(p*p))
    # kern_ref: SMEM (K*K,)  f32  softmax kernel weights with spatial term folded in
    # x_ref:    VMEM (1, C, h_tile, W) f32  center strip (last strip may be partial)
    # halo_ref: VMEM (1, C, hpt, W)    f32  rows above (first `halo`) and below
    #                                       (next `halo`) the current strip
    # o_ref:    VMEM (1, dyn, h_tile, W)
    _, C, _, W = x_ref.shape
    half = ksize // 2
    t = pl.program_id(1)

    xc = x_ref[0]                                            # (C, h_tile, W)

    # Halo-padded strip: rows [-halo, h_tile + halo) in strip-local coords.
    if halo > 0:
        hal = halo_ref[0]                                    # (C, hpt, W)
        pad = jnp.concatenate(
            [hal[:, :halo, :], xc, hal[:, halo:2 * halo, :]], axis=1)
    else:
        pad = xc                                             # (C, h_tile + 2*halo, W)

    # Hoist SMEM scalar reads out of the hot K*K loop; scalar operands lower to
    # a single splat vreg at use (no materialized (h_tile, W) buffers).
    pfs = [pf_ref[c] for c in range(C)]
    kws = [kern_ref[i] for i in range(ksize * ksize)]

    # Validity against the *original* image extent (kept as thin vectors).
    grow = t * h_tile + jax.lax.broadcasted_iota(jnp.int32, (h_tile, 1), 0)
    gcol = jax.lax.broadcasted_iota(jnp.int32, (1, W), 1)
    col_ok = []
    for b in range(ksize):
        dj = (b - half) * dilation
        col_ok.append((gcol + dj >= 0) & (gcol + dj < W))    # (1, W)

    num = jnp.zeros((dyn, h_tile, W), jnp.float32)
    den = jnp.zeros((h_tile, W), jnp.float32)

    # Static K x K tap loop (K is tiny) — unrolled at trace time.
    for a in range(ksize):
        di = (a - half) * dilation
        row_ok = (grow + di >= 0) & (grow + di < h_total)    # (h_tile, 1)
        # H shift = static sublane slice of the halo-padded strip (no XLU roll).
        xs_h = pad[:, halo + di: halo + di + h_tile, :]      # (C, h_tile, W)
        for b in range(ksize):
            dj = (b - half) * dilation
            xs = xs_h
            if dj != 0:
                xs = pltpu.roll(xs, (-dj) % W, axis=2)       # lane shift (XLU)
            valid = row_ok & col_ok[b]                       # (h_tile, W)

            # Range term: sum_c params[c] * (x_c(p) - x_c(q))^2   (params <= 0).
            d2 = jnp.zeros((h_tile, W), jnp.float32)
            for c in range(C):
                diff = xc[c] - xs[c]
                d2 = d2 + (diff * diff) * pfs[c]

            w = kws[a * ksize + b] * jnp.exp(d2)             # spatial term pre-folded
            w = jnp.where(valid, w, jnp.float32(0.0))

            num = num + w[None, :, :] * xs[:dyn]             # only kept channels
            den = den + w

    inv = pl.reciprocal(den, approx=True)                    # 1 EUP recip + muls
    o_ref[0] = (num * inv[None, :, :]).astype(o_ref.dtype)


def _choose_h_tile(C, dyn, H, W, budget_bytes=6 * 1024 * 1024):
    # Rough live footprint per output row: center block (x2 buf), halo block,
    # padded strip, per-tap shifted copies, num/den/out.
    bytes_per_row = max(1, (7 * C + 3 * dyn + 6) * W * 4)
    rows = max(8, budget_bytes // bytes_per_row)
    h_tile = max(8, (rows // 8) * 8)               # sublane multiple of 8
    if h_tile >= H:
        return int(H), 1                           # single full-H strip (legal block)
    num_tiles = -(-H // h_tile)
    return int(h_tile), int(num_tiles)


def weight_transform_kernel_bilateral_filter(x, params, kernel, dynamic_size, dilation):
    """x: (N, C, H, W), params: (C+2,), kernel: (K, K)."""
    N, C, H, W = x.shape
    ksize = kernel.shape[0]
    half = ksize // 2
    halo = half * dilation
    assert dynamic_size <= C
    orig_dtype = x.dtype

    xf = x.astype(jnp.float32)
    params = params.astype(jnp.float32)
    kernel = kernel.astype(jnp.float32)

    # Module's parameter transforms (plain-JAX glue, computed once per call).
    t_params = -(params * params)                               # (C+2,)
    t_kernel = jax.nn.softmax(kernel.reshape(-1) / ksize)       # (K*K,)

    # Fold the spatial term exp(p[C]*dy^2 + p[C+1]*dx^2) into the kernel weights.
    offs = (jnp.arange(ksize, dtype=jnp.float32) - half) * dilation
    dy2 = (offs * offs)[:, None]
    dx2 = (offs * offs)[None, :]
    spatial = jnp.exp(t_params[C] * dy2 + t_params[C + 1] * dx2).reshape(-1)
    t_kernel = (t_kernel * spatial).astype(jnp.float32)         # (K*K,)
    p_feat = t_params[:C].astype(jnp.float32)                   # (C,)

    # H-strip tiling.  Each tile reads its own strip of x plus a small gathered
    # halo array (2*halo rows / tile), instead of re-reading neighbor strips or
    # padding the whole image.  Out-of-image halo rows are index-clamped; they
    # are masked inside the kernel anyway.
    h_tile, num_tiles = _choose_h_tile(C, dynamic_size, H, W)
    hpt = max(8, -(-(2 * halo) // 8) * 8)          # halo rows per tile, sublane-aligned

    tile_ids = jnp.arange(num_tiles, dtype=jnp.int32)[:, None]
    if halo > 0:
        r = jnp.arange(halo, dtype=jnp.int32)[None, :]
    else:
        r = jnp.zeros((1, 0), jnp.int32)
    top_idx = tile_ids * h_tile - halo + r                      # (T, halo)
    bot_idx = tile_ids * h_tile + h_tile + r                    # (T, halo)
    idx = jnp.concatenate([top_idx, bot_idx], axis=1)           # (T, 2*halo)
    if hpt > 2 * halo:
        idx = jnp.pad(idx, ((0, 0), (0, hpt - 2 * halo)))
    idx = jnp.clip(idx, 0, H - 1).reshape(-1)                   # (T*hpt,)
    halos = jnp.take(xf, idx, axis=2)                           # (N, C, T*hpt, W)

    flops = int(N * H * W * ksize * ksize * (4 * C + 2 * dynamic_size + 6))
    transcendentals = int(N * H * W * ksize * ksize)
    bytes_accessed = int(4 * (N * C * H * W + N * C * num_tiles * hpt * W
                              + N * dynamic_size * H * W))

    out = pl.pallas_call(
        functools.partial(_bilateral_kernel, ksize=ksize, dilation=dilation,
                          h_total=H, h_tile=h_tile, halo=halo, dyn=dynamic_size),
        out_shape=jax.ShapeDtypeStruct((N, dynamic_size, H, W), orig_dtype),
        grid=(N, num_tiles),
        in_specs=[
            pl.BlockSpec(memory_space=pltpu.MemorySpace.SMEM),              # p_feat
            pl.BlockSpec(memory_space=pltpu.MemorySpace.SMEM),              # kernel w
            pl.BlockSpec((1, C, h_tile, W), lambda n, t: (n, 0, t, 0)),     # center strip
            pl.BlockSpec((1, C, hpt, W), lambda n, t: (n, 0, t, 0)),        # halo rows
        ],
        out_specs=pl.BlockSpec((1, dynamic_size, h_tile, W),
                               lambda n, t: (n, 0, t, 0)),
        compiler_params=pltpu.CompilerParams(
            dimension_semantics=("parallel", "parallel"),
            vmem_limit_bytes=32 * 1024 * 1024),
        cost_estimate=pl.CostEstimate(flops=flops,
                                      transcendentals=transcendentals,
                                      bytes_accessed=bytes_accessed),
    )(p_feat, t_kernel, xf, halos)
    return out


if __name__ == "__main__":
    # Small, deterministic example consistent with the module's __init__.
    total_dim = 4
    dynamic_size = 2
    kernel_size = 3
    dilation = 1
    N, H, W = 2, 16, 16

    key = jax.random.PRNGKey(0)
    k_x, k_p = jax.random.split(key)

    x = jax.random.normal(k_x, (N, total_dim, H, W), dtype=jnp.float32)
    # nn.Parameter(torch.randn(total_dim + 2)); params.data.mul_(0.5)
    params = 0.5 * jax.random.normal(k_p, (total_dim + 2,), dtype=jnp.float32)
    # nn.Parameter(torch.randn(K, K)); kernel.data.zero_()
    kernel = jnp.zeros((kernel_size, kernel_size), dtype=jnp.float32)

    out = weight_transform_kernel_bilateral_filter(x, params, kernel, dynamic_size, dilation)
    jax.block_until_ready(out)
    assert out.shape == (N, dynamic_size, H, W), out.shape
    assert bool(jnp.all(jnp.isfinite(out)))
    print("KERNEL_OK")
</pallas_src>

<mosaic_0001>
module attributes {stable_mosaic.version = 11 : i64} {
  func.func @_bilateral_kernel(%arg0: i32, %arg1: i32, %arg2: memref<4xf32, #tpu.memory_space<smem>>, %arg3: memref<9xf32, #tpu.memory_space<smem>>, %arg4: memref<1x4x16x16xf32, #tpu.memory_space<vmem>>, %arg5: memref<1x4x8x16xf32, #tpu.memory_space<vmem>>, %arg6: memref<1x2x16x16xf32, #tpu.memory_space<vmem>>) attributes {dimension_semantics = [#tpu.dimension_semantics<parallel>, #tpu.dimension_semantics<parallel>], iteration_bounds = array<i64: 2, 1>, scalar_prefetch = 0 : i64, scratch_operands = 0 : i64, tpu.core_type = #tpu.core_type<tc>, window_params = [{transform_indices = @transform_0, window_bounds = array<i64: 4>}, {transform_indices = @transform_1, window_bounds = array<i64: 9>}, {transform_indices = @transform_2, window_bounds = array<i64: 1, 4, 16, 16>}, {transform_indices = @transform_3, window_bounds = array<i64: 1, 4, 8, 16>}, {transform_indices = @transform_4, window_bounds = array<i64: 1, 2, 16, 16>}]} {
    %c0 = arith.constant 0 : index
    %c0_0 = arith.constant 0 : index
    %c0_1 = arith.constant 0 : index
    %c0_2 = arith.constant 0 : index
    %0 = vector.load %arg4[%c0, %c0_0, %c0_1, %c0_2] : memref<1x4x16x16xf32, #tpu.memory_space<vmem>>, vector<1x4x16x16xf32>
    %1 = vector.shape_cast %0 : vector<1x4x16x16xf32> to vector<4x16x16xf32>
    %c0_3 = arith.constant 0 : index
    %c0_4 = arith.constant 0 : index
    %c0_5 = arith.constant 0 : index
    %c0_6 = arith.constant 0 : index
    %2 = vector.load %arg5[%c0_3, %c0_4, %c0_5, %c0_6] : memref<1x4x8x16xf32, #tpu.memory_space<vmem>>, vector<1x4x8x16xf32>
    %3 = vector.shape_cast %2 : vector<1x4x8x16xf32> to vector<4x8x16xf32>
    %4 = vector.extract_strided_slice %3 {offsets = [0, 0, 0], sizes = [4, 1, 16], strides = [1, 1, 1]} : vector<4x8x16xf32> to vector<4x1x16xf32>
    %5 = vector.extract_strided_slice %3 {offsets = [0, 1, 0], sizes = [4, 1, 16], strides = [1, 1, 1]} : vector<4x8x16xf32> to vector<4x1x16xf32>
    %6 = tpu.concatenate %4, %1, %5 in 1 : vector<4x1x16xf32>, vector<4x16x16xf32>, vector<4x1x16xf32> -> vector<4x18x16xf32>
    %c0_7 = arith.constant 0 : index
    %7 = memref.load %arg2[%c0_7] : memref<4xf32, #tpu.memory_space<smem>>
    %c1 = arith.constant 1 : index
    %8 = memref.load %arg2[%c1] : memref<4xf32, #tpu.memory_space<smem>>
    %c2 = arith.constant 2 : index
    %9 = memref.load %arg2[%c2] : memref<4xf32, #tpu.memory_space<smem>>
    %c3 = arith.constant 3 : index
    %10 = memref.load %arg2[%c3] : memref<4xf32, #tpu.memory_space<smem>>
    %c0_8 = arith.constant 0 : index
    %11 = memref.load %arg3[%c0_8] : memref<9xf32, #tpu.memory_space<smem>>
    %c1_9 = arith.constant 1 : index
    %12 = memref.load %arg3[%c1_9] : memref<9xf32, #tpu.memory_space<smem>>
    %c2_10 = arith.constant 2 : index
    %13 = memref.load %arg3[%c2_10] : memref<9xf32, #tpu.memory_space<smem>>
    %c3_11 = arith.constant 3 : index
    %14 = memref.load %arg3[%c3_11] : memref<9xf32, #tpu.memory_space<smem>>
    %c4 = arith.constant 4 : index
    %15 = memref.load %arg3[%c4] : memref<9xf32, #tpu.memory_space<smem>>
    %c5 = arith.constant 5 : index
    %16 = memref.load %arg3[%c5] : memref<9xf32, #tpu.memory_space<smem>>
    %c6 = arith.constant 6 : index
    %17 = memref.load %arg3[%c6] : memref<9xf32, #tpu.memory_space<smem>>
    %c7 = arith.constant 7 : index
    %18 = memref.load %arg3[%c7] : memref<9xf32, #tpu.memory_space<smem>>
    %c8 = arith.constant 8 : index
    %19 = memref.load %arg3[%c8] : memref<9xf32, #tpu.memory_space<smem>>
    %c16_i32 = arith.constant 16 : i32
    %20 = arith.muli %arg1, %c16_i32 : i32
    %21 = tpu.iota {dimensions = array<i32: 0>} : vector<16x1xi32>
    %22 = vector.broadcast %20 : i32 to vector<16x1xi32>
    %23 = arith.addi %22, %21 : vector<16x1xi32>
    %24 = tpu.iota {dimensions = array<i32: 1>} : vector<1x16xi32>
    %c-1_i32 = arith.constant -1 : i32
    %25 = vector.broadcast %c-1_i32 : i32 to vector<1x16xi32>
    %26 = arith.addi %24, %25 : vector<1x16xi32>
    %c0_i32 = arith.constant 0 : i32
    %27 = vector.broadcast %c0_i32 : i32 to vector<1x16xi32>
    %28 = arith.cmpi sge, %26, %27 : vector<1x16xi32>
    %c-1_i32_12 = arith.constant -1 : i32
    %29 = vector.broadcast %c-1_i32_12 : i32 to vector<1x16xi32>
    %30 = arith.addi %24, %29 : vector<1x16xi32>
    %c16_i32_13 = arith.constant 16 : i32
    %31 = vector.broadcast %c16_i32_13 : i32 to vector<1x16xi32>
    %32 = arith.cmpi slt, %30, %31 : vector<1x16xi32>
    %33 = arith.andi %28, %32 : vector<1x16xi1>
    %c0_i32_14 = arith.constant 0 : i32
    %34 = vector.broadcast %c0_i32_14 : i32 to vector<1x16xi32>
    %35 = arith.addi %24, %34 : vector<1x16xi32>
    %c0_i32_15 = arith.constant 0 : i32
    %36 = vector.broadcast %c0_i32_15 : i32 to vector<1x16xi32>
    %37 = arith.cmpi sge, %35, %36 : vector<1x16xi32>
    %c0_i32_16 = arith.constant 0 : i32
    %38 = vector.broadcast %c0_i32_16 : i32 to vector<1x16xi32>
    %39 = arith.addi %24, %38 : vector<1x16xi32>
    %c16_i32_17 = arith.constant 16 : i32
    %40 = vector.broadcast %c16_i32_17 : i32 to vector<1x16xi32>
    %41 = arith.cmpi slt, %39, %40 : vector<1x16xi32>
    %42 = arith.andi %37, %41 : vector<1x16xi1>
    %c1_i32 = arith.constant 1 : i32
    %43 = vector.broadcast %c1_i32 : i32 to vector<1x16xi32>
    %44 = arith.addi %24, %43 : vector<1x16xi32>
    %c0_i32_18 = arith.constant 0 : i32
    %45 = vector.broadcast %c0_i32_18 : i32 to vector<1x16xi32>
    %46 = arith.cmpi sge, %44, %45 : vector<1x16xi32>
    %c1_i32_19 = arith.constant 1 : i32
    %47 = vector.broadcast %c1_i32_19 : i32 to vector<1x16xi32>
    %48 = arith.addi %24, %47 : vector<1x16xi32>
    %c16_i32_20 = arith.constant 16 : i32
    %49 = vector.broadcast %c16_i32_20 : i32 to vector<1x16xi32>
    %50 = arith.cmpi slt, %48, %49 : vector<1x16xi32>
    %51 = arith.andi %46, %50 : vector<1x16xi1>
    %cst = arith.constant 0.000000e+00 : f32
    %52 = vector.broadcast %cst : f32 to vector<2x16x16xf32>
    %cst_21 = arith.constant 0.000000e+00 : f32
    %53 = vector.broadcast %cst_21 : f32 to vector<16x16xf32>
    %c-1_i32_22 = arith.constant -1 : i32
    %54 = vector.broadcast %c-1_i32_22 : i32 to vector<16x1xi32>
    %55 = arith.addi %23, %54 : vector<16x1xi32>
    %c0_i32_23 = arith.constant 0 : i32
    %56 = vector.broadcast %c0_i32_23 : i32 to vector<16x1xi32>
    %57 = arith.cmpi sge, %55, %56 : vector<16x1xi32>
    %c-1_i32_24 = arith.constant -1 : i32
    %58 = vector.broadcast %c-1_i32_24 : i32 to vector<16x1xi32>
    %59 = arith.addi %23, %58 : vector<16x1xi32>
    %c16_i32_25 = arith.constant 16 : i32
    %60 = vector.broadcast %c16_i32_25 : i32 to vector<16x1xi32>
    %61 = arith.cmpi slt, %59, %60 : vector<16x1xi32>
    %62 = arith.andi %57, %61 : vector<16x1xi1>
    %63 = vector.extract_strided_slice %6 {offsets = [0, 0, 0], sizes = [4, 16, 16], strides = [1, 1, 1]} : vector<4x18x16xf32> to vector<4x16x16xf32>
    %c1_i32_26 = arith.constant 1 : i32
    %64 = tpu.dynamic_rotate %63 by %c1_i32_26 dim 2 : vector<4x16x16xf32>, i32 -> vector<4x16x16xf32>
    %65 = vector.broadcast %62 : vector<16x1xi1> to vector<16x16xi1>
    %66 = vector.broadcast %33 : vector<1x16xi1> to vector<16x16xi1>
    %67 = arith.andi %65, %66 : vector<16x16xi1>
    %cst_27 = arith.constant 0.000000e+00 : f32
    %68 = vector.broadcast %cst_27 : f32 to vector<16x16xf32>
    %69 = vector.extract_strided_slice %1 {offsets = [0, 0, 0], sizes = [1, 16, 16], strides = [1, 1, 1]} : vector<4x16x16xf32> to vector<1x16x16xf32>
    %70 = vector.shape_cast %69 : vector<1x16x16xf32> to vector<16x16xf32>
    %71 = vector.extract_strided_slice %64 {offsets = [0, 0, 0], sizes = [1, 16, 16], strides = [1, 1, 1]} : vector<4x16x16xf32> to vector<1x16x16xf32>
    %72 = vector.shape_cast %71 : vector<1x16x16xf32> to vector<16x16xf32>
    %73 = arith.subf %70, %72 : vector<16x16xf32>
    %74 = arith.mulf %73, %73 : vector<16x16xf32>
    %75 = vector.broadcast %7 : f32 to vector<16x16xf32>
    %76 = arith.mulf %74, %75 : vector<16x16xf32>
    %77 = arith.addf %68, %76 : vector<16x16xf32>
    %78 = vector.extract_strided_slice %1 {offsets = [1, 0, 0], sizes = [1, 16, 16], strides = [1, 1, 1]} : vector<4x16x16xf32> to vector<1x16x16xf32>
    %79 = vector.shape_cast %78 : vector<1x16x16xf32> to vector<16x16xf32>
    %80 = vector.extract_strided_slice %64 {offsets = [1, 0, 0], sizes = [1, 16, 16], strides = [1, 1, 1]} : vector<4x16x16xf32> to vector<1x16x16xf32>
    %81 = vector.shape_cast %80 : vector<1x16x16xf32> to vector<16x16xf32>
    %82 = arith.subf %79, %81 : vector<16x16xf32>
    %83 = arith.mulf %82, %82 : vector<16x16xf32>
    %84 = vector.broadcast %8 : f32 to vector<16x16xf32>
    %85 = arith.mulf %83, %84 : vector<16x16xf32>
    %86 = arith.addf %77, %85 : vector<16x16xf32>
    %87 = vector.extract_strided_slice %1 {offsets = [2, 0, 0], sizes = [1, 16, 16], strides = [1, 1, 1]} : vector<4x16x16xf32> to vector<1x16x16xf32>
    %88 = vector.shape_cast %87 : vector<1x16x16xf32> to vector<16x16xf32>
    %89 = vector.extract_strided_slice %64 {offsets = [2, 0, 0], sizes = [1, 16, 16], strides = [1, 1, 1]} : vector<4x16x16xf32> to vector<1x16x16xf32>
    %90 = vector.shape_cast %89 : vector<1x16x16xf32> to vector<16x16xf32>
    %91 = arith.subf %88, %90 : vector<16x16xf32>
    %92 = arith.mulf %91, %91 : vector<16x16xf32>
    %93 = vector.broadcast %9 : f32 to vector<16x16xf32>
    %94 = arith.mulf %92, %93 : vector<16x16xf32>
    %95 = arith.addf %86, %94 : vector<16x16xf32>
    %96 = vector.extract_strided_slice %1 {offsets = [3, 0, 0], sizes = [1, 16, 16], strides = [1, 1, 1]} : vector<4x16x16xf32> to vector<1x16x16xf32>
    %97 = vector.shape_cast %96 : vector<1x16x16xf32> to vector<16x16xf32>
    %98 = vector.extract_strided_slice %64 {offsets = [3, 0, 0], sizes = [1, 16, 16], strides = [1, 1, 1]} : vector<4x16x16xf32> to vector<1x16x16xf32>
    %99 = vector.shape_cast %98 : vector<1x16x16xf32> to vector<16x16xf32>
    %100 = arith.subf %97, %99 : vector<16x16xf32>
    %101 = arith.mulf %100, %100 : vector<16x16xf32>
    %102 = vector.broadcast %10 : f32 to vector<16x16xf32>
    %103 = arith.mulf %101, %102 : vector<16x16xf32>
    %104 = arith.addf %95, %103 : vector<16x16xf32>
    %105 = math.exp %104 : vector<16x16xf32>
    %106 = vector.broadcast %11 : f32 to vector<16x16xf32>
    %107 = arith.mulf %106, %105 : vector<16x16xf32>
    %cst_28 = arith.constant 0.000000e+00 : f32
    %108 = vector.broadcast %cst_28 : f32 to vector<16x16xf32>
    %109 = arith.select %67, %107, %108 : vector<16x16xi1>, vector<16x16xf32>
    %110 = vector.shape_cast %109 : vector<16x16xf32> to vector<1x16x16xf32>
    %111 = vector.extract_strided_slice %64 {offsets = [0, 0, 0], sizes = [2, 16, 16], strides = [1, 1, 1]} : vector<4x16x16xf32> to vector<2x16x16xf32>
    %112 = vector.broadcast %110 : vector<1x16x16xf32> to vector<2x16x16xf32>
    %113 = arith.mulf %112, %111 : vector<2x16x16xf32>
    %114 = arith.addf %52, %113 : vector<2x16x16xf32>
    %115 = arith.addf %53, %109 : vector<16x16xf32>
    %116 = vector.broadcast %62 : vector<16x1xi1> to vector<16x16xi1>
    %117 = vector.broadcast %42 : vector<1x16xi1> to vector<16x16xi1>
    %118 = arith.andi %116, %117 : vector<16x16xi1>
    %cst_29 = arith.constant 0.000000e+00 : f32
    %119 = vector.broadcast %cst_29 : f32 to vector<16x16xf32>
    %120 = vector.extract_strided_slice %1 {offsets = [0, 0, 0], sizes = [1, 16, 16], strides = [1, 1, 1]} : vector<4x16x16xf32> to vector<1x16x16xf32>
    %121 = vector.shape_cast %120 : vector<1x16x16xf32> to vector<16x16xf32>
    %122 = vector.extract_strided_slice %63 {offsets = [0, 0, 0], sizes = [1, 16, 16], strides = [1, 1, 1]} : vector<4x16x16xf32> to vector<1x16x16xf32>
    %123 = vector.shape_cast %122 : vector<1x16x16xf32> to vector<16x16xf32>
    %124 = arith.subf %121, %123 : vector<16x16xf32>
    %125 = arith.mulf %124, %124 : vector<16x16xf32>
    %126 = vector.broadcast %7 : f32 to vector<16x16xf32>
    %127 = arith.mulf %125, %126 : vector<16x16xf32>
    %128 = arith.addf %119, %127 : vector<16x16xf32>
    %129 = vector.extract_strided_slice %1 {offsets = [1, 0, 0], sizes = [1, 16, 16], strides = [1, 1, 1]} : vector<4x16x16xf32> to vector<1x16x16xf32>
    %130 = vector.shape_cast %129 : vector<1x16x16xf32> to vector<16x16xf32>
    %131 = vector.extract_strided_slice %63 {offsets = [1, 0, 0], sizes = [1, 16, 16], strides = [1, 1, 1]} : vector<4x16x16xf32> to vector<1x16x16xf32>
    %132 = vector.shape_cast %131 : vector<1x16x16xf32> to vector<16x16xf32>
    %133 = arith.subf %130, %132 : vector<16x16xf32>
    %134 = arith.mulf %133, %133 : vector<16x16xf32>
    %135 = vector.broadcast %8 : f32 to vector<16x16xf32>
    %136 = arith.mulf %134, %135 : vector<16x16xf32>
    %137 = arith.addf %128, %136 : vector<16x16xf32>
    %138 = vector.extract_strided_slice %1 {offsets = [2, 0, 0], sizes = [1, 16, 16], strides = [1, 1, 1]} : vector<4x16x16xf32> to vector<1x16x16xf32>
    %139 = vector.shape_cast %138 : vector<1x16x16xf32> to vector<16x16xf32>
    %140 = vector.extract_strided_slice %63 {offsets = [2, 0, 0], sizes = [1, 16, 16], strides = [1, 1, 1]} : vector<4x16x16xf32> to vector<1x16x16xf32>
    %141 = vector.shape_cast %140 : vector<1x16x16xf32> to vector<16x16xf32>
    %142 = arith.subf %139, %141 : vector<16x16xf32>
    %143 = arith.mulf %142, %142 : vector<16x16xf32>
    %144 = vector.broadcast %9 : f32 to vector<16x16xf32>
    %145 = arith.mulf %143, %144 : vector<16x16xf32>
    %146 = arith.addf %137, %145 : vector<16x16xf32>
    %147 = vector.extract_strided_slice %1 {offsets = [3, 0, 0], sizes = [1, 16, 16], strides = [1, 1, 1]} : vector<4x16x16xf32> to vector<1x16x16xf32>
    %148 = vector.shape_cast %147 : vector<1x16x16xf32> to vector<16x16xf32>
    %149 = vector.extract_strided_slice %63 {offsets = [3, 0, 0], sizes = [1, 16, 16], strides = [1, 1, 1]} : vector<4x16x16xf32> to vector<1x16x16xf32>
    %150 = vector.shape_cast %149 : vector<1x16x16xf32> to vector<16x16xf32>
    %151 = arith.subf %148, %150 : vector<16x16xf32>
    %152 = arith.mulf %151, %151 : vector<16x16xf32>
    %153 = vector.broadcast %10 : f32 to vector<16x16xf32>
    %154 = arith.mulf %152, %153 : vector<16x16xf32>
    %155 = arith.addf %146, %154 : vector<16x16xf32>
    %156 = math.exp %155 : vector<16x16xf32>
    %157 = vector.broadcast %12 : f32 to vector<16x16xf32>
    %158 = arith.mulf %157, %156 : vector<16x16xf32>
    %cst_30 = arith.constant 0.000000e+00 : f32
    %159 = vector.broadcast %cst_30 : f32 to vector<16x16xf32>
    %160 = arith.select %118, %158, %159 : vector<16x16xi1>, vector<16x16xf32>
    %161 = vector.shape_cast %160 : vector<16x16xf32> to vector<1x16x16xf32>
    %162 = vector.extract_strided_slice %63 {offsets = [0, 0, 0], sizes = [2, 16, 16], strides = [1, 1, 1]} : vector<4x16x16xf32> to vector<2x16x16xf32>
    %163 = vector.broadcast %161 : vector<1x16x16xf32> to vector<2x16x16xf32>
    %164 = arith.mulf %163, %162 : vector<2x16x16xf32>
    %165 = arith.addf %114, %164 : vector<2x16x16xf32>
    %166 = arith.addf %115, %160 : vector<16x16xf32>
    %c15_i32 = arith.constant 15 : i32
    %167 = tpu.dynamic_rotate %63 by %c15_i32 dim 2 : vector<4x16x16xf32>, i32 -> vector<4x16x16xf32>
    %168 = vector.broadcast %62 : vector<16x1xi1> to vector<16x16xi1>
    %169 = vector.broadcast %51 : vector<1x16xi1> to vector<16x16xi1>
    %170 = arith.andi %168, %169 : vector<16x16xi1>
    %cst_31 = arith.constant 0.000000e+00 : f32
    %171 = vector.broadcast %cst_31 : f32 to vector<16x16xf32>
    %172 = vector.extract_strided_slice %1 {offsets = [0, 0, 0], sizes = [1, 16, 16], strides = [1, 1, 1]} : vector<4x16x16xf32> to vector<1x16x16xf32>
    %173 = vector.shape_cast %172 : vector<1x16x16xf32> to vector<16x16xf32>
    %174 = vector.extract_strided_slice %167 {offsets = [0, 0, 0], sizes = [1, 16, 16], strides = [1, 1, 1]} : vector<4x16x16xf32> to vector<1x16x16xf32>
    %175 = vector.shape_cast %174 : vector<1x16x16xf32> to vector<16x16xf32>
    %176 = arith.subf %173, %175 : vector<16x16xf32>
    %177 = arith.mulf %176, %176 : vector<16x16xf32>
    %178 = vector.broadcast %7 : f32 to vector<16x16xf32>
    %179 = arith.mulf %177, %178 : vector<16x16xf32>
    %180 = arith.addf %171, %179 : vector<16x16xf32>
    %181 = vector.extract_strided_slice %1 {offsets = [1, 0, 0], sizes = [1, 16, 16], strides = [1, 1, 1]} : vector<4x16x16xf32> to vector<1x16x16xf32>
    %182 = vector.shape_cast %181 : vector<1x16x16xf32> to vector<16x16xf32>
    %183 = vector.extract_strided_slice %167 {offsets = [1, 0, 0], sizes = [1, 16, 16], strides = [1, 1, 1]} : vector<4x16x16xf32> to vector<1x16x16xf32>
    %184 = vector.shape_cast %183 : vector<1x16x16xf32> to vector<16x16xf32>
    %185 = arith.subf %182, %184 : vector<16x16xf32>
    %186 = arith.mulf %185, %185 : vector<16x16xf32>
    %187 = vector.broadcast %8 : f32 to vector<16x16xf32>
    %188 = arith.mulf %186, %187 : vector<16x16xf32>
    %189 = arith.addf %180, %188 : vector<16x16xf32>
    %190 = vector.extract_strided_slice %1 {offsets = [2, 0, 0], sizes = [1, 16, 16], strides = [1, 1, 1]} : vector<4x16x16xf32> to vector<1x16x16xf32>
    %191 = vector.shape_cast %190 : vector<1x16x16xf32> to vector<16x16xf32>
    %192 = vector.extract_strided_slice %167 {offsets = [2, 0, 0], sizes = [1, 16, 16], strides = [1, 1, 1]} : vector<4x16x16xf32> to vector<1x16x16xf32>
    %193 = vector.shape_cast %192 : vector<1x16x16xf32> to vector<16x16xf32>
    %194 = arith.subf %191, %193 : vector<16x16xf32>
    %195 = arith.mulf %194, %194 : vector<16x16xf32>
    %196 = vector.broadcast %9 : f32 to vector<16x16xf32>
    %197 = arith.mulf %195, %196 : vector<16x16xf32>
    %198 = arith.addf %189, %197 : vector<16x16xf32>
    %199 = vector.extract_strided_slice %1 {offsets = [3, 0, 0], sizes = [1, 16, 16], strides = [1, 1, 1]} : vector<4x16x16xf32> to vector<1x16x16xf32>
    %200 = vector.shape_cast %199 : vector<1x16x16xf32> to vector<16x16xf32>
    %201 = vector.extract_strided_slice %167 {offsets = [3, 0, 0], sizes = [1, 16, 16], strides = [1, 1, 1]} : vector<4x16x16xf32> to vector<1x16x16xf32>
    %202 = vector.shape_cast %201 : vector<1x16x16xf32> to vector<16x16xf32>
    %203 = arith.subf %200, %202 : vector<16x16xf32>
    %204 = arith.mulf %203, %203 : vector<16x16xf32>
    %205 = vector.broadcast %10 : f32 to vector<16x16xf32>
    %206 = arith.mulf %204, %205 : vector<16x16xf32>
    %207 = arith.addf %198, %206 : vector<16x16xf32>
    %208 = math.exp %207 : vector<16x16xf32>
    %209 = vector.broadcast %13 : f32 to vector<16x16xf32>
    %210 = arith.mulf %209, %208 : vector<16x16xf32>
    %cst_32 = arith.constant 0.000000e+00 : f32
    %211 = vector.broadcast %cst_32 : f32 to vector<16x16xf32>
    %212 = arith.select %170, %210, %211 : vector<16x16xi1>, vector<16x16xf32>
    %213 = vector.shape_cast %212 : vector<16x16xf32> to vector<1x16x16xf32>
    %214 = vector.extract_strided_slice %167 {offsets = [0, 0, 0], sizes = [2, 16, 16], strides = [1, 1, 1]} : vector<4x16x16xf32> to vector<2x16x16xf32>
    %215 = vector.broadcast %213 : vector<1x16x16xf32> to vector<2x16x16xf32>
    %216 = arith.mulf %215, %214 : vector<2x16x16xf32>
    %217 = arith.addf %165, %216 : vector<2x16x16xf32>
    %218 = arith.addf %166, %212 : vector<16x16xf32>
    %c0_i32_33 = arith.constant 0 : i32
    %219 = vector.broadcast %c0_i32_33 : i32 to vector<16x1xi32>
    %220 = arith.addi %23, %219 : vector<16x1xi32>
    %c0_i32_34 = arith.constant 0 : i32
    %221 = vector.broadcast %c0_i32_34 : i32 to vector<16x1xi32>
    %222 = arith.cmpi sge, %220, %221 : vector<16x1xi32>
    %c0_i32_35 = arith.constant 0 : i32
    %223 = vector.broadcast %c0_i32_35 : i32 to vector<16x1xi32>
    %224 = arith.addi %23, %223 : vector<16x1xi32>
    %c16_i32_36 = arith.constant 16 : i32
    %225 = vector.broadcast %c16_i32_36 : i32 to vector<16x1xi32>
    %226 = arith.cmpi slt, %224, %225 : vector<16x1xi32>
    %227 = arith.andi %222, %226 : vector<16x1xi1>
    %228 = vector.extract_strided_slice %6 {offsets = [0, 1, 0], sizes = [4, 16, 16], strides = [1, 1, 1]} : vector<4x18x16xf32> to vector<4x16x16xf32>
    %c1_i32_37 = arith.constant 1 : i32
    %229 = tpu.dynamic_rotate %228 by %c1_i32_37 dim 2 : vector<4x16x16xf32>, i32 -> vector<4x16x16xf32>
    %230 = vector.broadcast %227 : vector<16x1xi1> to vector<16x16xi1>
    %231 = vector.broadcast %33 : vector<1x16xi1> to vector<16x16xi1>
    %232 = arith.andi %230, %231 : vector<16x16xi1>
    %cst_38 = arith.constant 0.000000e+00 : f32
    %233 = vector.broadcast %cst_38 : f32 to vector<16x16xf32>
    %234 = vector.extract_strided_slice %1 {offsets = [0, 0, 0], sizes = [1, 16, 16], strides = [1, 1, 1]} : vector<4x16x16xf32> to vector<1x16x16xf32>
    %235 = vector.shape_cast %234 : vector<1x16x16xf32> to vector<16x16xf32>
    %236 = vector.extract_strided_slice %229 {offsets = [0, 0, 0], sizes = [1, 16, 16], strides = [1, 1, 1]} : vector<4x16x16xf32> to vector<1x16x16xf32>
    %237 = vector.shape_cast %236 : vector<1x16x16xf32> to vector<16x16xf32>
    %238 = arith.subf %235, %237 : vector<16x16xf32>
    %239 = arith.mulf %238, %238 : vector<16x16xf32>
    %240 = vector.broadcast %7 : f32 to vector<16x16xf32>
    %241 = arith.mulf %239, %240 : vector<16x16xf32>
    %242 = arith.addf %233, %241 : vector<16x16xf32>
    %243 = vector.extract_strided_slice %1 {offsets = [1, 0, 0], sizes = [1, 16, 16], strides = [1, 1, 1]} : vector<4x16x16xf32> to vector<1x16x16xf32>
    %244 = vector.shape_cast %243 : vector<1x16x16xf32> to vector<16x16xf32>
    %245 = vector.extract_strided_slice %229 {offsets = [1, 0, 0], sizes = [1, 16, 16], strides = [1, 1, 1]} : vector<4x16x16xf32> to vector<1x16x16xf32>
    %246 = vector.shape_cast %245 : vector<1x16x16xf32> to vector<16x16xf32>
    %247 = arith.subf %244, %246 : vector<16x16xf32>
    %248 = arith.mulf %247, %247 : vector<16x16xf32>
    %249 = vector.broadcast %8 : f32 to vector<16x16xf32>
    %250 = arith.mulf %248, %249 : vector<16x16xf32>
    %251 = arith.addf %242, %250 : vector<16x16xf32>
    %252 = vector.extract_strided_slice %1 {offsets = [2, 0, 0], sizes = [1, 16, 16], strides = [1, 1, 1]} : vector<4x16x16xf32> to vector<1x16x16xf32>
    %253 = vector.shape_cast %252 : vector<1x16x16xf32> to vector<16x16xf32>
    %254 = vector.extract_strided_slice %229 {offsets = [2, 0, 0], sizes = [1, 16, 16], strides = [1, 1, 1]} : vector<4x16x16xf32> to vector<1x16x16xf32>
    %255 = vector.shape_cast %254 : vector<1x16x16xf32> to vector<16x16xf32>
    %256 = arith.subf %253, %255 : vector<16x16xf32>
    %257 = arith.mulf %256, %256 : vector<16x16xf32>
    %258 = vector.broadcast %9 : f32 to vector<16x16xf32>
    %259 = arith.mulf %257, %258 : vector<16x16xf32>
    %260 = arith.addf %251, %259 : vector<16x16xf32>
    %261 = vector.extract_strided_slice %1 {offsets = [3, 0, 0], sizes = [1, 16, 16], strides = [1, 1, 1]} : vector<4x16x16xf32> to vector<1x16x16xf32>
    %262 = vector.shape_cast %261 : vector<1x16x16xf32> to vector<16x16xf32>
    %263 = vector.extract_strided_slice %229 {offsets = [3, 0, 0], sizes = [1, 16, 16], strides = [1, 1, 1]} : vector<4x16x16xf32> to vector<1x16x16xf32>
    %264 = vector.shape_cast %263 : vector<1x16x16xf32> to vector<16x16xf32>
    %265 = arith.subf %262, %264 : vector<16x16xf32>
    %266 = arith.mulf %265, %265 : vector<16x16xf32>
    %267 = vector.broadcast %10 : f32 to vector<16x16xf32>
    %268 = arith.mulf %266, %267 : vector<16x16xf32>
    %269 = arith.addf %260, %268 : vector<16x16xf32>
    %270 = math.exp %269 : vector<16x16xf32>
    %271 = vector.broadcast %14 : f32 to vector<16x16xf32>
    %272 = arith.mulf %271, %270 : vector<16x16xf32>
    %cst_39 = arith.constant 0.000000e+00 : f32
    %273 = vector.broadcast %cst_39 : f32 to vector<16x16xf32>
    %274 = arith.select %232, %272, %273 : vector<16x16xi1>, vector<16x16xf32>
    %275 = vector.shape_cast %274 : vector<16x16xf32> to vector<1x16x16xf32>
    %276 = vector.extract_strided_slice %229 {offsets = [0, 0, 0], sizes = [2, 16, 16], strides = [1, 1, 1]} : vector<4x16x16xf32> to vector<2x16x16xf32>
    %277 = vector.broadcast %275 : vector<1x16x16xf32> to vector<2x16x16xf32>
    %278 = arith.mulf %277, %276 : vector<2x16x16xf32>
    %279 = arith.addf %217, %278 : vector<2x16x16xf32>
    %280 = arith.addf %218, %274 : vector<16x16xf32>
    %281 = vector.broadcast %227 : vector<16x1xi1> to vector<16x16xi1>
    %282 = vector.broadcast %42 : vector<1x16xi1> to vector<16x16xi1>
    %283 = arith.andi %281, %282 : vector<16x16xi1>
    %cst_40 = arith.constant 0.000000e+00 : f32
    %284 = vector.broadcast %cst_40 : f32 to vector<16x16xf32>
    %285 = vector.extract_strided_slice %1 {offsets = [0, 0, 0], sizes = [1, 16, 16], strides = [1, 1, 1]} : vector<4x16x16xf32> to vector<1x16x16xf32>
    %286 = vector.shape_cast %285 : vector<1x16x16xf32> to vector<16x16xf32>
    %287 = vector.extract_strided_slice %228 {offsets = [0, 0, 0], sizes = [1, 16, 16], strides = [1, 1, 1]} : vector<4x16x16xf32> to vector<1x16x16xf32>
    %288 = vector.shape_cast %287 : vector<1x16x16xf32> to vector<16x16xf32>
    %289 = arith.subf %286, %288 : vector<16x16xf32>
    %290 = arith.mulf %289, %289 : vector<16x16xf32>
    %291 = vector.broadcast %7 : f32 to vector<16x16xf32>
    %292 = arith.mulf %290, %291 : vector<16x16xf32>
    %293 = arith.addf %284, %292 : vector<16x16xf32>
    %294 = vector.extract_strided_slice %1 {offsets = [1, 0, 0], sizes = [1, 16, 16], strides = [1, 1, 1]} : vector<4x16x16xf32> to vector<1x16x16xf32>
    %295 = vector.shape_cast %294 : vector<1x16x16xf32> to vector<16x16xf32>
    %296 = vector.extract_strided_slice %228 {offsets = [1, 0, 0], sizes = [1, 16, 16], strides = [1, 1, 1]} : vector<4x16x16xf32> to vector<1x16x16xf32>
    %297 = vector.shape_cast %296 : vector<1x16x16xf32> to vector<16x16xf32>
    %298 = arith.subf %295, %297 : vector<16x16xf32>
    %299 = arith.mulf %298, %298 : vector<16x16xf32>
    %300 = vector.broadcast %8 : f32 to vector<16x16xf32>
    %301 = arith.mulf %299, %300 : vector<16x16xf32>
    %302 = arith.addf %293, %301 : vector<16x16xf32>
    %303 = vector.extract_strided_slice %1 {offsets = [2, 0, 0], sizes = [1, 16, 16], strides = [1, 1, 1]} : vector<4x16x16xf32> to vector<1x16x16xf32>
    %304 = vector.shape_cast %303 : vector<1x16x16xf32> to vector<16x16xf32>
    %305 = vector.extract_strided_slice %228 {offsets = [2, 0, 0], sizes = [1, 16, 16], strides = [1, 1, 1]} : vector<4x16x16xf32> to vector<1x16x16xf32>
    %306 = vector.shape_cast %305 : vector<1x16x16xf32> to vector<16x16xf32>
    %307 = arith.subf %304, %306 : vector<16x16xf32>
    %308 = arith.mulf %307, %307 : vector<16x16xf32>
    %309 = vector.broadcast %9 : f32 to vector<16x16xf32>
    %310 = arith.mulf %308, %309 : vector<16x16xf32>
    %311 = arith.addf %302, %310 : vector<16x16xf32>
    %312 = vector.extract_strided_slice %1 {offsets = [3, 0, 0], sizes = [1, 16, 16], strides = [1, 1, 1]} : vector<4x16x16xf32> to vector<1x16x16xf32>
    %313 = vector.shape_cast %312 : vector<1x16x16xf32> to vector<16x16xf32>
    %314 = vector.extract_strided_slice %228 {offsets = [3, 0, 0], sizes = [1, 16, 16], strides = [1, 1, 1]} : vector<4x16x16xf32> to vector<1x16x16xf32>
    %315 = vector.shape_cast %314 : vector<1x16x16xf32> to vector<16x16xf32>
    %316 = arith.subf %313, %315 : vector<16x16xf32>
    %317 = arith.mulf %316, %316 : vector<16x16xf32>
    %318 = vector.broadcast %10 : f32 to vector<16x16xf32>
    %319 = arith.mulf %317, %318 : vector<16x16xf32>
    %320 = arith.addf %311, %319 : vector<16x16xf32>
    %321 = math.exp %320 : vector<16x16xf32>
    %322 = vector.broadcast %15 : f32 to vector<16x16xf32>
    %323 = arith.mulf %322, %321 : vector<16x16xf32>
    %cst_41 = arith.constant 0.000000e+00 : f32
    %324 = vector.broadcast %cst_41 : f32 to vector<16x16xf32>
    %325 = arith.select %283, %323, %324 : vector<16x16xi1>, vector<16x16xf32>
    %326 = vector.shape_cast %325 : vector<16x16xf32> to vector<1x16x16xf32>
    %327 = vector.extract_strided_slice %228 {offsets = [0, 0, 0], sizes = [2, 16, 16], strides = [1, 1, 1]} : vector<4x16x16xf32> to vector<2x16x16xf32>
    %328 = vector.broadcast %326 : vector<1x16x16xf32> to vector<2x16x16xf32>
    %329 = arith.mulf %328, %327 : vector<2x16x16xf32>
    %330 = arith.addf %279, %329 : vector<2x16x16xf32>
    %331 = arith.addf %280, %325 : vector<16x16xf32>
    %c15_i32_42 = arith.constant 15 : i32
    %332 = tpu.dynamic_rotate %228 by %c15_i32_42 dim 2 : vector<4x16x16xf32>, i32 -> vector<4x16x16xf32>
    %333 = vector.broadcast %227 : vector<16x1xi1> to vector<16x16xi1>
    %334 = vector.broadcast %51 : vector<1x16xi1> to vector<16x16xi1>
    %335 = arith.andi %333, %334 : vector<16x16xi1>
    %cst_43 = arith.constant 0.000000e+00 : f32
    %336 = vector.broadcast %cst_43 : f32 to vector<16x16xf32>
    %337 = vector.extract_strided_slice %1 {offsets = [0, 0, 0], sizes = [1, 16, 16], strides = [1, 1, 1]} : vector<4x16x16xf32> to vector<1x16x16xf32>
    %338 = vector.shape_cast %337 : vector<1x16x16xf32> to vector<16x16xf32>
    %339 = vector.extract_strided_slice %332 {offsets = [0, 0, 0], sizes = [1, 16, 16], strides = [1, 1, 1]} : vector<4x16x16xf32> to vector<1x16x16xf32>
    %340 = vector.shape_cast %339 : vector<1x16x16xf32> to vector<16x16xf32>
    %341 = arith.subf %338, %340 : vector<16x16xf32>
    %342 = arith.mulf %341, %341 : vector<16x16xf32>
    %343 = vector.broadcast %7 : f32 to vector<16x16xf32>
    %344 = arith.mulf %342, %343 : vector<16x16xf32>
    %345 = arith.addf %336, %344 : vector<16x16xf32>
    %346 = vector.extract_strided_slice %1 {offsets = [1, 0, 0], sizes = [1, 16, 16], strides = [1, 1, 1]} : vector<4x16x16xf32> to vector<1x16x16xf32>
    %347 = vector.shape_cast %346 : vector<1x16x16xf32> to vector<16x16xf32>
    %348 = vector.extract_strided_slice %332 {offsets = [1, 0, 0], sizes = [1, 16, 16], strides = [1, 1, 1]} : vector<4x16x16xf32> to vector<1x16x16xf32>
    %349 = vector.shape_cast %348 : vector<1x16x16xf32> to vector<16x16xf32>
    %350 = arith.subf %347, %349 : vector<16x16xf32>
    %351 = arith.mulf %350, %350 : vector<16x16xf32>
    %352 = vector.broadcast %8 : f32 to vector<16x16xf32>
    %353 = arith.mulf %351, %352 : vector<16x16xf32>
    %354 = arith.addf %345, %353 : vector<16x16xf32>
    %355 = vector.extract_strided_slice %1 {offsets = [2, 0, 0], sizes = [1, 16, 16], strides = [1, 1, 1]} : vector<4x16x16xf32> to vector<1x16x16xf32>
    %356 = vector.shape_cast %355 : vector<1x16x16xf32> to vector<16x16xf32>
    %357 = vector.extract_strided_slice %332 {offsets = [2, 0, 0], sizes = [1, 16, 16], strides = [1, 1, 1]} : vector<4x16x16xf32> to vector<1x16x16xf32>
    %358 = vector.shape_cast %357 : vector<1x16x16xf32> to vector<16x16xf32>
    %359 = arith.subf %356, %358 : vector<16x16xf32>
    %360 = arith.mulf %359, %359 : vector<16x16xf32>
    %361 = vector.broadcast %9 : f32 to vector<16x16xf32>
    %362 = arith.mulf %360, %361 : vector<16x16xf32>
    %363 = arith.addf %354, %362 : vector<16x16xf32>
    %364 = vector.extract_strided_slice %1 {offsets = [3, 0, 0], sizes = [1, 16, 16], strides = [1, 1, 1]} : vector<4x16x16xf32> to vector<1x16x16xf32>
    %365 = vector.shape_cast %364 : vector<1x16x16xf32> to vector<16x16xf32>
    %366 = vector.extract_strided_slice %332 {offsets = [3, 0, 0], sizes = [1, 16, 16], strides = [1, 1, 1]} : vector<4x16x16xf32> to vector<1x16x16xf32>
    %367 = vector.shape_cast %366 : vector<1x16x16xf32> to vector<16x16xf32>
    %368 = arith.subf %365, %367 : vector<16x16xf32>
    %369 = arith.mulf %368, %368 : vector<16x16xf32>
    %370 = vector.broadcast %10 : f32 to vector<16x16xf32>
    %371 = arith.mulf %369, %370 : vector<16x16xf32>
    %372 = arith.addf %363, %371 : vector<16x16xf32>
    %373 = math.exp %372 : vector<16x16xf32>
    %374 = vector.broadcast %16 : f32 to vector<16x16xf32>
    %375 = arith.mulf %374, %373 : vector<16x16xf32>
    %cst_44 = arith.constant 0.000000e+00 : f32
    %376 = vector.broadcast %cst_44 : f32 to vector<16x16xf32>
    %377 = arith.select %335, %375, %376 : vector<16x16xi1>, vector<16x16xf32>
    %378 = vector.shape_cast %377 : vector<16x16xf32> to vector<1x16x16xf32>
    %379 = vector.extract_strided_slice %332 {offsets = [0, 0, 0], sizes = [2, 16, 16], strides = [1, 1, 1]} : vector<4x16x16xf32> to vector<2x16x16xf32>
    %380 = vector.broadcast %378 : vector<1x16x16xf32> to vector<2x16x16xf32>
    %381 = arith.mulf %380, %379 : vector<2x16x16xf32>
    %382 = arith.addf %330, %381 : vector<2x16x16xf32>
    %383 = arith.addf %331, %377 : vector<16x16xf32>
    %c1_i32_45 = arith.constant 1 : i32
    %384 = vector.broadcast %c1_i32_45 : i32 to vector<16x1xi32>
    %385 = arith.addi %23, %384 : vector<16x1xi32>
    %c0_i32_46 = arith.constant 0 : i32
    %386 = vector.broadcast %c0_i32_46 : i32 to vector<16x1xi32>
    %387 = arith.cmpi sge, %385, %386 : vector<16x1xi32>
    %c1_i32_47 = arith.constant 1 : i32
    %388 = vector.broadcast %c1_i32_47 : i32 to vector<16x1xi32>
    %389 = arith.addi %23, %388 : vector<16x1xi32>
    %c16_i32_48 = arith.constant 16 : i32
    %390 = vector.broadcast %c16_i32_48 : i32 to vector<16x1xi32>
    %391 = arith.cmpi slt, %389, %390 : vector<16x1xi32>
    %392 = arith.andi %387, %391 : vector<16x1xi1>
    %393 = vector.extract_strided_slice %6 {offsets = [0, 2, 0], sizes = [4, 16, 16], strides = [1, 1, 1]} : vector<4x18x16xf32> to vector<4x16x16xf32>
    %c1_i32_49 = arith.constant 1 : i32
    %394 = tpu.dynamic_rotate %393 by %c1_i32_49 dim 2 : vector<4x16x16xf32>, i32 -> vector<4x16x16xf32>
    %395 = vector.broadcast %392 : vector<16x1xi1> to vector<16x16xi1>
    %396 = vector.broadcast %33 : vector<1x16xi1> to vector<16x16xi1>
    %397 = arith.andi %395, %396 : vector<16x16xi1>
    %cst_50 = arith.constant 0.000000e+00 : f32
    %398 = vector.broadcast %cst_50 : f32 to vector<16x16xf32>
    %399 = vector.extract_strided_slice %1 {offsets = [0, 0, 0], sizes = [1, 16, 16], strides = [1, 1, 1]} : vector<4x16x16xf32> to vector<1x16x16xf32>
    %400 = vector.shape_cast %399 : vector<1x16x16xf32> to vector<16x16xf32>
    %401 = vector.extract_strided_slice %394 {offsets = [0, 0, 0], sizes = [1, 16, 16], strides = [1, 1, 1]} : vector<4x16x16xf32> to vector<1x16x16xf32>
    %402 = vector.shape_cast %401 : vector<1x16x16xf32> to vector<16x16xf32>
    %403 = arith.subf %400, %402 : vector<16x16xf32>
    %404 = arith.mulf %403, %403 : vector<16x16xf32>
    %405 = vector.broadcast %7 : f32 to vector<16x16xf32>
    %406 = arith.mulf %404, %405 : vector<16x16xf32>
    %407 = arith.addf %398, %406 : vector<16x16xf32>
    %408 = vector.extract_strided_slice %1 {offsets = [1, 0, 0], sizes = [1, 16, 16], strides = [1, 1, 1]} : vector<4x16x16xf32> to vector<1x16x16xf32>
    %409 = vector.shape_cast %408 : vector<1x16x16xf32> to vector<16x16xf32>
    %410 = vector.extract_strided_slice %394 {offsets = [1, 0, 0], sizes = [1, 16, 16], strides = [1, 1, 1]} : vector<4x16x16xf32> to vector<1x16x16xf32>
    %411 = vector.shape_cast %410 : vector<1x16x16xf32> to vector<16x16xf32>
    %412 = arith.subf %409, %411 : vector<16x16xf32>
    %413 = arith.mulf %412, %412 : vector<16x16xf32>
    %414 = vector.broadcast %8 : f32 to vector<16x16xf32>
    %415 = arith.mulf %413, %414 : vector<16x16xf32>
    %416 = arith.addf %407, %415 : vector<16x16xf32>
    %417 = vector.extract_strided_slice %1 {offsets = [2, 0, 0], sizes = [1, 16, 16], strides = [1, 1, 1]} : vector<4x16x16xf32> to vector<1x16x16xf32>
    %418 = vector.shape_cast %417 : vector<1x16x16xf32> to vector<16x16xf32>
    %419 = vector.extract_strided_slice %394 {offsets = [2, 0, 0], sizes = [1, 16, 16], strides = [1, 1, 1]} : vector<4x16x16xf32> to vector<1x16x16xf32>
    %420 = vector.shape_cast %419 : vector<1x16x16xf32> to vector<16x16xf32>
    %421 = arith.subf %418, %420 : vector<16x16xf32>
    %422 = arith.mulf %421, %421 : vector<16x16xf32>
    %423 = vector.broadcast %9 : f32 to vector<16x16xf32>
    %424 = arith.mulf %422, %423 : vector<16x16xf32>
    %425 = arith.addf %416, %424 : vector<16x16xf32>
    %426 = vector.extract_strided_slice %1 {offsets = [3, 0, 0], sizes = [1, 16, 16], strides = [1, 1, 1]} : vector<4x16x16xf32> to vector<1x16x16xf32>
    %427 = vector.shape_cast %426 : vector<1x16x16xf32> to vector<16x16xf32>
    %428 = vector.extract_strided_slice %394 {offsets = [3, 0, 0], sizes = [1, 16, 16], strides = [1, 1, 1]} : vector<4x16x16xf32> to vector<1x16x16xf32>
    %429 = vector.shape_cast %428 : vector<1x16x16xf32> to vector<16x16xf32>
    %430 = arith.subf %427, %429 : vector<16x16xf32>
    %431 = arith.mulf %430, %430 : vector<16x16xf32>
    %432 = vector.broadcast %10 : f32 to vector<16x16xf32>
    %433 = arith.mulf %431, %432 : vector<16x16xf32>
    %434 = arith.addf %425, %433 : vector<16x16xf32>
    %435 = math.exp %434 : vector<16x16xf32>
    %436 = vector.broadcast %17 : f32 to vector<16x16xf32>
    %437 = arith.mulf %436, %435 : vector<16x16xf32>
    %cst_51 = arith.constant 0.000000e+00 : f32
    %438 = vector.broadcast %cst_51 : f32 to vector<16x16xf32>
    %439 = arith.select %397, %437, %438 : vector<16x16xi1>, vector<16x16xf32>
    %440 = vector.shape_cast %439 : vector<16x16xf32> to vector<1x16x16xf32>
    %441 = vector.extract_strided_slice %394 {offsets = [0, 0, 0], sizes = [2, 16, 16], strides = [1, 1, 1]} : vector<4x16x16xf32> to vector<2x16x16xf32>
    %442 = vector.broadcast %440 : vector<1x16x16xf32> to vector<2x16x16xf32>
    %443 = arith.mulf %442, %441 : vector<2x16x16xf32>
    %444 = arith.addf %382, %443 : vector<2x16x16xf32>
    %445 = arith.addf %383, %439 : vector<16x16xf32>
    %446 = vector.broadcast %392 : vector<16x1xi1> to vector<16x16xi1>
    %447 = vector.broadcast %42 : vector<1x16xi1> to vector<16x16xi1>
    %448 = arith.andi %446, %447 : vector<16x16xi1>
    %cst_52 = arith.constant 0.000000e+00 : f32
    %449 = vector.broadcast %cst_52 : f32 to vector<16x16xf32>
    %450 = vector.extract_strided_slice %1 {offsets = [0, 0, 0], sizes = [1, 16, 16], strides = [1, 1, 1]} : vector<4x16x16xf32> to vector<1x16x16xf32>
    %451 = vector.shape_cast %450 : vector<1x16x16xf32> to vector<16x16xf32>
    %452 = vector.extract_strided_slice %393 {offsets = [0, 0, 0], sizes = [1, 16, 16], strides = [1, 1, 1]} : vector<4x16x16xf32> to vector<1x16x16xf32>
    %453 = vector.shape_cast %452 : vector<1x16x16xf32> to vector<16x16xf32>
    %454 = arith.subf %451, %453 : vector<16x16xf32>
    %455 = arith.mulf %454, %454 : vector<16x16xf32>
    %456 = vector.broadcast %7 : f32 to vector<16x16xf32>
    %457 = arith.mulf %455, %456 : vector<16x16xf32>
    %458 = arith.addf %449, %457 : vector<16x16xf32>
    %459 = vector.extract_strided_slice %1 {offsets = [1, 0, 0], sizes = [1, 16, 16], strides = [1, 1, 1]} : vector<4x16x16xf32> to vector<1x16x16xf32>
    %460 = vector.shape_cast %459 : vector<1x16x16xf32> to vector<16x16xf32>
    %461 = vector.extract_strided_slice %393 {offsets = [1, 0, 0], sizes = [1, 16, 16], strides = [1, 1, 1]} : vector<4x16x16xf32> to vector<1x16x16xf32>
    %462 = vector.shape_cast %461 : vector<1x16x16xf32> to vector<16x16xf32>
    %463 = arith.subf %460, %462 : vector<16x16xf32>
    %464 = arith.mulf %463, %463 : vector<16x16xf32>
    %465 = vector.broadcast %8 : f32 to vector<16x16xf32>
    %466 = arith.mulf %464, %465 : vector<16x16xf32>
    %467 = arith.addf %458, %466 : vector<16x16xf32>
    %468 = vector.extract_strided_slice %1 {offsets = [2, 0, 0], sizes = [1, 16, 16], strides = [1, 1, 1]} : vector<4x16x16xf32> to vector<1x16x16xf32>
    %469 = vector.shape_cast %468 : vector<1x16x16xf32> to vector<16x16xf32>
    %470 = vector.extract_strided_slice %393 {offsets = [2, 0, 0], sizes = [1, 16, 16], strides = [1, 1, 1]} : vector<4x16x16xf32> to vector<1x16x16xf32>
    %471 = vector.shape_cast %470 : vector<1x16x16xf32> to vector<16x16xf32>
    %472 = arith.subf %469, %471 : vector<16x16xf32>
    %473 = arith.mulf %472, %472 : vector<16x16xf32>
    %474 = vector.broadcast %9 : f32 to vector<16x16xf32>
    %475 = arith.mulf %473, %474 : vector<16x16xf32>
    %476 = arith.addf %467, %475 : vector<16x16xf32>
    %477 = vector.extract_strided_slice %1 {offsets = [3, 0, 0], sizes = [1, 16, 16], strides = [1, 1, 1]} : vector<4x16x16xf32> to vector<1x16x16xf32>
    %478 = vector.shape_cast %477 : vector<1x16x16xf32> to vector<16x16xf32>
    %479 = vector.extract_strided_slice %393 {offsets = [3, 0, 0], sizes = [1, 16, 16], strides = [1, 1, 1]} : vector<4x16x16xf32> to vector<1x16x16xf32>
    %480 = vector.shape_cast %479 : vector<1x16x16xf32> to vector<16x16xf32>
    %481 = arith.subf %478, %480 : vector<16x16xf32>
    %482 = arith.mulf %481, %481 : vector<16x16xf32>
    %483 = vector.broadcast %10 : f32 to vector<16x16xf32>
    %484 = arith.mulf %482, %483 : vector<16x16xf32>
    %485 = arith.addf %476, %484 : vector<16x16xf32>
    %486 = math.exp %485 : vector<16x16xf32>
    %487 = vector.broadcast %18 : f32 to vector<16x16xf32>
    %488 = arith.mulf %487, %486 : vector<16x16xf32>
    %cst_53 = arith.constant 0.000000e+00 : f32
    %489 = vector.broadcast %cst_53 : f32 to vector<16x16xf32>
    %490 = arith.select %448, %488, %489 : vector<16x16xi1>, vector<16x16xf32>
    %491 = vector.shape_cast %490 : vector<16x16xf32> to vector<1x16x16xf32>
    %492 = vector.extract_strided_slice %393 {offsets = [0, 0, 0], sizes = [2, 16, 16], strides = [1, 1, 1]} : vector<4x16x16xf32> to vector<2x16x16xf32>
    %493 = vector.broadcast %491 : vector<1x16x16xf32> to vector<2x16x16xf32>
    %494 = arith.mulf %493, %492 : vector<2x16x16xf32>
    %495 = arith.addf %444, %494 : vector<2x16x16xf32>
    %496 = arith.addf %445, %490 : vector<16x16xf32>
    %c15_i32_54 = arith.constant 15 : i32
    %497 = tpu.dynamic_rotate %393 by %c15_i32_54 dim 2 : vector<4x16x16xf32>, i32 -> vector<4x16x16xf32>
    %498 = vector.broadcast %392 : vector<16x1xi1> to vector<16x16xi1>
    %499 = vector.broadcast %51 : vector<1x16xi1> to vector<16x16xi1>
    %500 = arith.andi %498, %499 : vector<16x16xi1>
    %cst_55 = arith.constant 0.000000e+00 : f32
    %501 = vector.broadcast %cst_55 : f32 to vector<16x16xf32>
    %502 = vector.extract_strided_slice %1 {offsets = [0, 0, 0], sizes = [1, 16, 16], strides = [1, 1, 1]} : vector<4x16x16xf32> to vector<1x16x16xf32>
    %503 = vector.shape_cast %502 : vector<1x16x16xf32> to vector<16x16xf32>
    %504 = vector.extract_strided_slice %497 {offsets = [0, 0, 0], sizes = [1, 16, 16], strides = [1, 1, 1]} : vector<4x16x16xf32> to vector<1x16x16xf32>
    %505 = vector.shape_cast %504 : vector<1x16x16xf32> to vector<16x16xf32>
    %506 = arith.subf %503, %505 : vector<16x16xf32>
    %507 = arith.mulf %506, %506 : vector<16x16xf32>
    %508 = vector.broadcast %7 : f32 to vector<16x16xf32>
    %509 = arith.mulf %507, %508 : vector<16x16xf32>
    %510 = arith.addf %501, %509 : vector<16x16xf32>
    %511 = vector.extract_strided_slice %1 {offsets = [1, 0, 0], sizes = [1, 16, 16], strides = [1, 1, 1]} : vector<4x16x16xf32> to vector<1x16x16xf32>
    %512 = vector.shape_cast %511 : vector<1x16x16xf32> to vector<16x16xf32>
    %513 = vector.extract_strided_slice %497 {offsets = [1, 0, 0], sizes = [1, 16, 16], strides = [1, 1, 1]} : vector<4x16x16xf32> to vector<1x16x16xf32>
    %514 = vector.shape_cast %513 : vector<1x16x16xf32> to vector<16x16xf32>
    %515 = arith.subf %512, %514 : vector<16x16xf32>
    %516 = arith.mulf %515, %515 : vector<16x16xf32>
    %517 = vector.broadcast %8 : f32 to vector<16x16xf32>
    %518 = arith.mulf %516, %517 : vector<16x16xf32>
    %519 = arith.addf %510, %518 : vector<16x16xf32>
    %520 = vector.extract_strided_slice %1 {offsets = [2, 0, 0], sizes = [1, 16, 16], strides = [1, 1, 1]} : vector<4x16x16xf32> to vector<1x16x16xf32>
    %521 = vector.shape_cast %520 : vector<1x16x16xf32> to vector<16x16xf32>
    %522 = vector.extract_strided_slice %497 {offsets = [2, 0, 0], sizes = [1, 16, 16], strides = [1, 1, 1]} : vector<4x16x16xf32> to vector<1x16x16xf32>
    %523 = vector.shape_cast %522 : vector<1x16x16xf32> to vector<16x16xf32>
    %524 = arith.subf %521, %523 : vector<16x16xf32>
    %525 = arith.mulf %524, %524 : vector<16x16xf32>
    %526 = vector.broadcast %9 : f32 to vector<16x16xf32>
    %527 = arith.mulf %525, %526 : vector<16x16xf32>
    %528 = arith.addf %519, %527 : vector<16x16xf32>
    %529 = vector.extract_strided_slice %1 {offsets = [3, 0, 0], sizes = [1, 16, 16], strides = [1, 1, 1]} : vector<4x16x16xf32> to vector<1x16x16xf32>
    %530 = vector.shape_cast %529 : vector<1x16x16xf32> to vector<16x16xf32>
    %531 = vector.extract_strided_slice %497 {offsets = [3, 0, 0], sizes = [1, 16, 16], strides = [1, 1, 1]} : vector<4x16x16xf32> to vector<1x16x16xf32>
    %532 = vector.shape_cast %531 : vector<1x16x16xf32> to vector<16x16xf32>
    %533 = arith.subf %530, %532 : vector<16x16xf32>
    %534 = arith.mulf %533, %533 : vector<16x16xf32>
    %535 = vector.broadcast %10 : f32 to vector<16x16xf32>
    %536 = arith.mulf %534, %535 : vector<16x16xf32>
    %537 = arith.addf %528, %536 : vector<16x16xf32>
    %538 = math.exp %537 : vector<16x16xf32>
    %539 = vector.broadcast %19 : f32 to vector<16x16xf32>
    %540 = arith.mulf %539, %538 : vector<16x16xf32>
    %cst_56 = arith.constant 0.000000e+00 : f32
    %541 = vector.broadcast %cst_56 : f32 to vector<16x16xf32>
    %542 = arith.select %500, %540, %541 : vector<16x16xi1>, vector<16x16xf32>
    %543 = vector.shape_cast %542 : vector<16x16xf32> to vector<1x16x16xf32>
    %544 = vector.extract_strided_slice %497 {offsets = [0, 0, 0], sizes = [2, 16, 16], strides = [1, 1, 1]} : vector<4x16x16xf32> to vector<2x16x16xf32>
    %545 = vector.broadcast %543 : vector<1x16x16xf32> to vector<2x16x16xf32>
    %546 = arith.mulf %545, %544 : vector<2x16x16xf32>
    %547 = arith.addf %495, %546 : vector<2x16x16xf32>
    %548 = arith.addf %496, %542 : vector<16x16xf32>
    %549 = tpu.reciprocal %548 {approx = true} : vector<16x16xf32> -> vector<16x16xf32>
    %550 = vector.shape_cast %549 : vector<16x16xf32> to vector<1x16x16xf32>
    %551 = vector.broadcast %550 : vector<1x16x16xf32> to vector<2x16x16xf32>
    %552 = arith.mulf %547, %551 : vector<2x16x16xf32>
    %c0_57 = arith.constant 0 : index
    %c0_58 = arith.constant 0 : index
    %c0_59 = arith.constant 0 : index
    %c0_60 = arith.constant 0 : index
    %553 = vector.load %arg6[%c0_57, %c0_58, %c0_59, %c0_60] : memref<1x2x16x16xf32, #tpu.memory_space<vmem>>, vector<1x2x16x16xf32>
    %554 = vector.shape_cast %553 : vector<1x2x16x16xf32> to vector<2x16x16xf32>
    %555 = vector.shape_cast %552 : vector<2x16x16xf32> to vector<1x2x16x16xf32>
    tpu.vector_store %arg6[%c0_57, %c0_58, %c0_59, %c0_60], %555 {strides = array<i32>} : memref<1x2x16x16xf32, #tpu.memory_space<vmem>>, vector<1x2x16x16xf32>,
    return
  }
  func.func @transform_0(%arg0: i32, %arg1: i32) -> i32 {
    %c0_i32 = arith.constant 0 : i32
    %c0_i32_0 = arith.constant 0 : i32
    return %c0_i32 : i32
  }
  func.func @transform_1(%arg0: i32, %arg1: i32) -> i32 {
    %c0_i32 = arith.constant 0 : i32
    %c0_i32_0 = arith.constant 0 : i32
    return %c0_i32 : i32
  }
  func.func @transform_2(%arg0: i32, %arg1: i32) -> (i32, i32, i32, i32) {
    %c0_i32 = arith.constant 0 : i32
    %c0_i32_0 = arith.constant 0 : i32
    %c0_i32_1 = arith.constant 0 : i32
    return %arg0, %c0_i32, %arg1, %c0_i32_0 : i32, i32, i32, i32
  }
  func.func @transform_3(%arg0: i32, %arg1: i32) -> (i32, i32, i32, i32) {
    %c0_i32 = arith.constant 0 : i32
    %c0_i32_0 = arith.constant 0 : i32
    %c0_i32_1 = arith.constant 0 : i32
    return %arg0, %c0_i32, %arg1, %c0_i32_0 : i32, i32, i32, i32
  }
  func.func @transform_4(%arg0: i32, %arg1: i32) -> (i32, i32, i32, i32) {
    %c0_i32 = arith.constant 0 : i32
    %c0_i32_0 = arith.constant 0 : i32
    %c0_i32_1 = arith.constant 0 : i32
    return %arg0, %c0_i32, %arg1, %c0_i32_0 : i32, i32, i32, i32
  }
}

</mosaic_0001>

<bundles_post_ra>
// kernel: tpu_custom_call.1
= control target key start
LH: loop header
LB: loop body
LE: loop exit
PB: predicated region body
PF: predicated region fallthrough
CT: control target
= control target key end

     0   :  { %s2907_s0 = inlined_call_operand.hbm [shape: f32[4], index: 0, kind: input, shape index: {}]   ;;  %s2908_s1 = inlined_call_operand.vmem [shape: f32[9], index: 1, kind: input, shape index: {}]   ;;  %s2909_s2 = inlined_call_operand.hbm [shape: f32[2,4,16,16], index: 2, kind: input, shape index: {}]   ;;  %s2910_s3 = inlined_call_operand.hbm [shape: f32[2,4,8,16], index: 3, kind: input, shape index: {}]   ;;  %s2911_s4 = inlined_call_operand.hbm [shape: f32[2,2,16,16], index: 4, kind: output, shape index: {}]  }
   0x1   :  { %2922 = sst [smem:[#allocation28_spill]] %s2907_s0 }
   0x2   :  { %2923 = sst [smem:[#allocation29_spill]] %s2908_s1 }
   0x3   :  { %2924 = sst [smem:[#allocation30_spill]] %s2909_s2 }
   0x4   :  { %9 = vsyncpa [#allocation5], 0 }
   0x5   :  { %10 = vsyncpa [#allocation6], 0 }
   0x6   :  { %11 = vsyncpa [#allocation3], 0 }
   0x7   :  { %13 = vsyncpa [#allocation3 + $0x1], 0 }
   0x8   :  { %14 = vsyncpa [#allocation10], 0 }
   0x9   :  { %16 = vsyncpa [#allocation10 + $0x1], 0 }
   0xa   :  { %17 = vsyncpa [#allocation4], 0 }
   0xb   :  { %19 = vsyncpa [#allocation4 + $0x1], 0  ;;  %s1846_s15 = smov 0   ;;  %s1848_s16 = smov 0  }
   0xc   :  { %s1850_s17 = smov 0   ;;  %s1852_s18 = smov 0  }
   0xd   :  { %s1854_s19 = smov 0   ;;  %s1856_s20 = smov 0  }
   0xe LB: > { %s1453_s21 = sadd.s32 4294967295, %s1807_s20   ;;  %s1454_s22 = sadd.s32 4294967294, %s1807_s20   ;;  %s1807_s20 = sphi %s1856_s20, %s25_s20   ;;  %s1803_s19 = sphi %s1854_s19, %s2970_s19   ;;  %s1799_s18 = sphi %s1852_s18, %s2969_s18   ;;  %s1795_s17 = sphi %s1850_s17, %s2968_s17   ;;  %s1791_s16 = sphi %s1848_s16, %s2967_s16   ;;  %s1787_s15 = sphi %s1846_s15, %s2966_s15  }
   0xf   : > { %s88_s23 = sadd.s32 1, %s1795_s17  ;;  %p95_p0 = scmp.ne.s32.totalorder %s1795_s17, %s1791_s16 }
  0x10   : > { %p96_p1 = scmp.eq.s32.totalorder %s1807_s20, 0  ;;  %p101_p2 = scmp.ne.s32.totalorder %s1791_s16, %s1787_s15 }
  0x11   : > { %p1884_p3 = scmp.eq.s32.totalorder %s1453_s21, 0  ;;  %p155_p4 = scmp.eq.s32.totalorder %s1453_s21, 1 }
  0x12   : > { %p97_p5 = por %p96_p1, %p95_p0  ;;  %p161_p6 = scmp.eq.s32.totalorder %s1454_s22, 1 }
  0x13   : > { %p1890_p7 = por %p1884_p3, %p101_p2  ;;  %p1894_p8 = por %p155_p4, %p95_p0 }
  0x14   : > { %p1898_p9 = por %p161_p6, %p101_p2  ;;  %p1455_p10 = scmp.ge.s32.totalorder %s1807_s20, 1 }
  0x15   : > { %s2927_s26 = scalar_select %p1894_p8, 1, 0 }
  0x16   : > { %s2928_s27 = scalar_select %p1898_p9, 1, 0 }
  0x17   : > { %p168_p11 = scmp.lt.s32.totalorder %s1807_s20, 3  ;;  %p1524_p1 = scmp.lt.s32.totalorder %s1807_s20, 2 }
  0x18   : > { %s2930_s1 = sld [smem:[#allocation29_spill]]  ;;  %s1926_s8 = sand.u32 1, %s1795_s17  }
  0x19   : > { %p1905_p13 = pnand %p1455_p10, %p168_p11  ;;  %p1915_p4 = pnand %p1524_p1, %p97_p5 }
  0x1a   : > { %s37_s9 = sadd.s32 1, %s1803_s19  ;;  %s1809_s10 = smov [#allocation2]  }
  0x1b   : > { %p1504_p0 = pneg %p1905_p13  ;;  %s2933_s0 = sld [smem:[#allocation28_spill]] }
  0x1d   : > { %p1921_p2 = pnand %p1504_p0, %p1884_p3 }
  0x1e   : > { %s190_s5 = sshll.u32 %s2930_s1, 4  ;;  %s191_s5 = int_to_ptr.vmem [resolvable:$true] %s190_s5 }
  0x1f   : > { %s1644_s13 = scalar_lea.vmem %s191_s5, 16  ;;  %p1646_p6 = pneg %p1921_p2 }
  0x20   : > { %p1645_p5 = scmp.ne.s32.totalorder %s191_s5, %s1644_s13  ;;  %p1652_p1 = scmp.lt.s32.totalorder %s191_s5, %s191_s5 }
  0x21   : > { %1507 = dma.hbm_to_smem (!%p1921_p2), %s2933_s0, 16, %s1809_s10, [#allocation5]  }
  0x22   : > { %p1647_p10 = pnand %p1646_p6, %p1645_p5  ;;  %p1653_p0 = scmp.lt.s32.totalorder %s1644_s13, %s1644_s13 }
  0x24   : > { %p1648_p11 = pneg %p1647_p10  ;;  %p1654_p12 = por %p1653_p0, %p1652_p1 }
  0x26   : > { %p1655_p9 = pnand %p1654_p12, %p1648_p11 }
  0x28   : > { %1658 = shalt.err (!%p1655_p9)
}
  0x29   : > { %s1810_s14 = smov [#allocation7]   ;;  %p39_p8 = scmp.ge.s32.totalorder %s37_s9, 2 }
  0x2a   : > { %1510 = dma.vmem_to_smem (!%p1921_p2), %s191_s5, 16, %s1810_s14, [#allocation6]  }
  0x2b   : > { %s1459_s21 = sshll.u32 %s1926_s8, 6  ;;  %s1487_s22 = sshll.u32 %s1803_s19, 10 }
  0x2c   : > { %s2972_s9 = smov (%p39_p8, %s37_s9), 0  ;;  %s2935_s2 = sld [smem:[#allocation30_spill]] }
  0x2d   : > { %2934 = sst [smem:[#allocation17_spill]] %s2972_s9  ;;  %s83_s7 = ssub.s32 %s1803_s19, %s2972_s9 }
  0x2e   : > { %s205_s11 = scalar_lea.vmem [#allocation8], %s1459_s21  ;;  %p86_p9 = scmp.eq.s32.totalorder %s83_s7, 0 }
  0x2f   : > { %s214_s12 = sshll.u32 %s205_s11, 4  ;;  %s202_s5 = scalar_lea.sflag [#allocation3], %s1926_s8  ;;  %s215_s12 = int_to_ptr.vmem [resolvable:$true] %s214_s12 }
  0x30   : > { %s1950_s13 = scalar_select %p86_p9, %s1795_s17, %s88_s23  }
  0x31   : > { %p1661_p12 = pneg %p1915_p4  ;;  %s1672_s14 = scalar_lea.vmem %s215_s12, 1024 }
  0x32   : > { %s213_s10 = scalar_lea.hbm %s2935_s2, %s1487_s22  ;;  %2936 = sst [smem:[#allocation18_spill]] %s1950_s13 }
  0x33   : > { %p1673_p2 = scmp.ne.s32.totalorder %s215_s12, %s1672_s14  ;;  %s1811_s29 = smov [#allocation8]  }
  0x34   : > { %s1677_s30 = sshll.u32 %s1811_s29, 4  ;;  %s1678_s30 = int_to_ptr.vmem [resolvable:$false] %s1677_s30 }
  0x35   : > { %p1675_p8 = pnand %p1673_p2, %p1661_p12  ;;  %s1679_s22 = scalar_lea.vmem %s1678_s30, 2048 }
  0x36   : > { %p1680_p6 = scmp.lt.s32.totalorder %s215_s12, %s1678_s30  ;;  %p1681_p10 = scmp.lt.s32.totalorder %s1679_s22, %s1672_s14 }
  0x37   : > { %p1676_p5 = pneg %p1675_p8 }
  0x38   : > { %p1682_p11 = por %p1681_p10, %p1680_p6 }
  0x3a   : > { %p1683_p1 = pnand %p1682_p11, %p1676_p5 }
  0x3c   : > { %1686 = shalt.err (!%p1683_p1)
}
  0x3d   : > { %s1812_s23 = smov 128   ;;  %s1813_s21 = smov 8  }
  0x3e   : > { %1514 = dma.hbm_to_vmem [thread:$0]  (!%p1915_p4), %s213_s10, 1024, %s215_s12, %s202_s5, %s1812_s23, %s1812_s23, %s1813_s21  }
  0x3f   : > { %s1462_s7 = sshll.u32 %s1926_s8, 5  ;;  %s1488_s11 = sshll.u32 %s1803_s19, 9 }
  0x40   : > { %s235_s1 = scalar_lea.hbm %s2910_s3, %s1488_s11  ;;  %s228_s30 = scalar_lea.vmem [#allocation9], %s1462_s7 }
  0x41   : > { %s236_s14 = sshll.u32 %s228_s30, 4  ;;  %s225_s22 = scalar_lea.sflag [#allocation10], %s1926_s8  ;;  %s237_s14 = int_to_ptr.vmem [resolvable:$true] %s236_s14 }
  0x42   : > { %s1700_s2 = scalar_lea.vmem %s237_s14, 512  ;;  %s1814_s9 = smov [#allocation9]  }
  0x43   : > { %p1701_p0 = scmp.ne.s32.totalorder %s237_s14, %s1700_s2  ;;  %s1705_s13 = sshll.u32 %s1814_s9, 4  ;;  %s1706_s13 = int_to_ptr.vmem [resolvable:$false] %s1705_s13 }
  0x44   : > { %s1707_s10 = scalar_lea.vmem %s1706_s13, 1024  ;;  %p1708_p8 = scmp.lt.s32.totalorder %s237_s14, %s1706_s13 }
  0x45   : > { %p1703_p9 = pnand %p1701_p0, %p1661_p12  ;;  %p1709_p5 = scmp.lt.s32.totalorder %s1707_s10, %s1700_s2 }
  0x47   : > { %p1704_p2 = pneg %p1703_p9  ;;  %p1710_p6 = por %p1709_p5, %p1708_p8 }
  0x49   : > { %p1711_p10 = pnand %p1710_p6, %p1704_p2 }
  0x4b   : > { %1714 = shalt.err (!%p1711_p10)
}
  0x4c   : > { %1517 = dma.hbm_to_vmem [thread:$0]  (!%p1915_p4), %s235_s1, 512, %s237_s14, %s225_s22, %s1812_s23, %s1812_s23, %s1813_s21  }
  0x4d   : > { %248 = sbr.rel (%p1905_p13) target bundleno = 600 (0x258), region = 36 }
  0x52   : > { %1766 = dma.done.wait (%p1884_p3), [#allocation5], 16  }
  0x53   : > { %1768 = vsyncadd (%p1884_p3), [#allocation5], 4294967280 }
  0x54   : > { %1770 = dma.done.wait (%p1884_p3), [#allocation6], 16  }
  0x55   : > { %1772 = vsyncadd (%p1884_p3), [#allocation6], 4294967280  ;;  %s1982_s0 = sand.u32 1, %s1791_s16  }
  0x56   : > { %s1468_s1 = sshll.u32 %s1982_s0, 6  ;;  %s259_s2 = scalar_lea.sflag [#allocation3], %s1982_s0 }
  0x57   : > { %s1986_s28 = scalar_lea.vmem [#allocation8], %s1468_s1 }
  0x58   : > { %1774 = dma.done.wait (%p1890_p7), %s259_s2, 1024  }
  0x59   : > { %1776 = vsyncadd (%p1890_p7), %s259_s2, 4294966272  ;;  %s1469_s24 = sshll.u32 %s1982_s0, 5  ;;  %s268_s6 = scalar_lea.sflag [#allocation10], %s1982_s0 }
  0x5a   : > { %s1996_s8 = scalar_lea.vmem [#allocation9], %s1469_s24 }
  0x5b   : > { %1778 = dma.done.wait (%p1890_p7), %s268_s6, 512  }
  0x5c   : > { %1780 = vsyncadd (%p1890_p7), %s268_s6, 4294966784 }
  0x5d   : > { %276 = sfence }
  0x5e   : > { %v2003_v0 = vld [vmem:[%s1986_s28] sm:$0xff]  ;;  %vm324_vm0 = vcmask 1040384   ;;  %v2007_v2 = vld [vmem:[%s1986_s28 + $0x10] sm:$0xff]  ;;  %v313_v4 = vld [vmem:[%s1996_s8 + $0x8] sm:$0xff]  ;;  %s1815_s25 = smov 16   ;;  %vm690_vm1 = vcmask 1046528  }
  0x5f   : > { %v312_v1 = vld [vmem:[%s1996_s8] sm:$0xff]  ;;  %v325_v3 = vrot.slane %v2003_v0, 7  ;;  %v328_v5 = vrot.slane %v2007_v2, 7  ;;  %v2013_v6 = vld [vmem:[%s1986_s28 + $0x8] sm:$0xff]  ;;  %v2016_v7 = vld [vmem:[%s1986_s28 + $0x18] sm:$0xff]  ;;  %vm994_vm2 = vcmask 1045504  }
  0x60   : > { %v326_v8 = vrot.slane %v2013_v6, 7  ;;  %v329_v9 = vrot.slane %v2016_v7, 7  ;;  %v2021_v10 = vld [vmem:[%s1986_s28 + $0x20] sm:$0xff]  ;;  %v2030_v13 = vld [vmem:[%s1986_s28 + $0x28] sm:$0xff]  ;;  %v2045_v18 = vld [vmem:[%s1986_s28 + $0x30] sm:$0xff]  ;;  %vm398_vm3 = vcmask 1047680  }
  0x61   : > { %v2024_v11 = vsel %vm324_vm0, %v312_v1, %v325_v3  ;;  %v2027_v12 = vsel %vm324_vm0, %v313_v4, %v328_v5  ;;  %v331_v16 = vrot.slane %v2021_v10, 7  ;;  %v332_v17 = vrot.slane %v2030_v13, 7  ;;  %v314_v19 = vld [vmem:[%s1996_s8 + $0x10] sm:$0xff]  ;;  %v2049_v20 = vld [vmem:[%s1986_s28 + $0x38] sm:$0xff]  ;;  %s1816_s9 = smov 113   ;;  %s1817_s12 = smov 127  }
  0x62   : > { %399 = vrot.lane.b32.xlu0 %v2024_v11, %s1815_s25  ;;  %405 = vrot.lane.b32.xlu1 %v2027_v12, %s1815_s25  ;;  %v2037_v14 = vsel %vm324_vm0, %v325_v3, %v326_v8  ;;  %v2040_v15 = vsel %vm324_vm0, %v328_v5, %v329_v9  ;;  %v334_v21 = vrot.slane %v2045_v18, 7  ;;  %v315_v24 = vld [vmem:[%s1996_s8 + $0x18] sm:$0xff]  ;;  %v335_v25 = vrot.slane %v2049_v20, 7  ;;  %s357_s13 = sld [smem:[#allocation2]]  ;;  %s301_s6 = scalar_lea.vmem [#allocation11], %s1469_s24 }
  0x63   : > { %v2057_v22 = vsel %vm324_vm0, %v314_v19, %v331_v16  ;;  %v2060_v23 = vsel %vm324_vm0, %v331_v16, %v332_v17  ;;  %v691_v28 = vrot.slane %v2024_v11, 1  ;;  %v692_v29 = vrot.slane %v2037_v14, 1  ;;  %s1471_s5 = sld [smem:[#allocation2 + $0x1]]  ;;  %s1317_s8 = sshll.u32 %s301_s6, 4  ;;  %s2857_s8 = int_to_ptr.vmem [resolvable:$true] %s1317_s8 }
  0x64   : > { %v2069_v26 = vsel %vm324_vm0, %v315_v24, %v334_v21  ;;  %v2072_v27 = vsel %vm324_vm0, %v334_v21, %v335_v25  ;;  %v353_v30 = vsel %vm324_vm0, %v326_v8, %v312_v1  ;;  %v354_v32 = vsel %vm324_vm0, %v329_v9, %v313_v4  ;;  %s1472_s23 = sld [smem:[#allocation2 + $0x2]]  ;;  %s1715_s24 = scalar_lea.vmem %s2857_s8, 512 }
  0x65   : > { %v694_v31 = vrot.slane %v353_v30, 1  ;;  %v696_v33 = vrot.slane %v2027_v12, 1  ;;  %v2084_v34 = vsel %vm690_vm1, %v691_v28, %v692_v29  ;;  %v697_v36 = vrot.slane %v2040_v15, 1  ;;  %s1473_s21 = sld [smem:[#allocation2 + $0x3]]  ;;  %p1716_p3 = scmp.ne.s32.totalorder %s2857_s8, %s1715_s24 }
  0x66   : > { %402 = vrot.lane.b32.xlu0 %v2037_v14, %s1815_s25  ;;  %408 = vrot.lane.b32.xlu1 %v2040_v15, %s1815_s25  ;;  %v699_v37 = vrot.slane %v354_v32, 1  ;;  %v701_v38 = vrot.slane %v2057_v22, 1  ;;  %v702_v39 = vrot.slane %v2060_v23, 1  ;;  %v355_v40 = vsel %vm324_vm0, %v332_v17, %v314_v19  ;;  %s2459_s7 = sld [smem:[#allocation7 + $0x1]]  ;;  %p2961_p7 = scmp.ne.s32.totalorder %s2927_s26, 0 }
  0x67   : > { %v2087_v35 = vsel %vm690_vm1, %v692_v29, %v694_v31  ;;  %v2098_v41 = vsel %vm690_vm1, %v696_v33, %v697_v36  ;;  %v704_v43 = vrot.slane %v355_v40, 1  ;;  %v706_v46 = vrot.slane %v2069_v26, 1  ;;  %s2472_s11 = sld [smem:[#allocation7]] }
  0x68   : > { %2937 = vst [vmem:[#allocation19_spill] sm:$0xff] %v2087_v35  ;;  %v2101_v42 = vsel %vm690_vm1, %v697_v36, %v699_v37  ;;  %v2108_v44 = vsel %vm690_vm1, %v701_v38, %v702_v39  ;;  %v707_v47 = vrot.slane %v2072_v27, 1  ;;  %v356_v48 = vsel %vm324_vm0, %v335_v25, %v315_v24  ;;  %s2521_s29 = sld [smem:[#allocation7 + $0x2]]  ;;  %p1717_p13 = pnand %p1716_p3, %p2961_p7 }
  0x69   : > { %2938 = vst [vmem:[#allocation20_spill] sm:$0xff] %v2101_v42  ;;  %v2111_v45 = vsel %vm690_vm1, %v702_v39, %v704_v43  ;;  %v709_v49 = vrot.slane %v356_v48, 1  ;;  %v995_v50 = vrot.slane %v2024_v11, 2  ;;  %v996_v53 = vrot.slane %v2037_v14, 2  ;;  %s2600_s30 = sld [smem:[#allocation7 + $0x3]] }
  0x6a   : > { %411 = vrot.lane.b32.xlu0 %v2057_v22, %s1815_s25  ;;  %414 = vrot.lane.b32.xlu1 %v2060_v23, %s1815_s25  ;;  %v2122_v51 = vsel %vm690_vm1, %v706_v46, %v707_v47  ;;  %v998_v54 = vrot.slane %v353_v30, 2  ;;  %v1000_v55 = vrot.slane %v2027_v12, 2  ;;  %v1001_v58 = vrot.slane %v2040_v15, 2  ;;  %s2602_s14 = sld [smem:[#allocation7 + $0x4]]  ;;  %p1718_p4 = pneg %p1717_p13 }
  0x6b   : > { %v2125_v52 = vsel %vm690_vm1, %v707_v47, %v709_v49  ;;  %v2134_v56 = vsel %vm994_vm2, %v995_v50, %v996_v53  ;;  %v1003_v59 = vrot.slane %v354_v32, 2  ;;  %v1005_v60 = vrot.slane %v2057_v22, 2  ;;  %s2733_s22 = sld [smem:[#allocation7 + $0x5]] }
  0x6c   : > { %2939 = vst [vmem:[#allocation21_spill] sm:$0xff] %v2134_v56  ;;  %v2137_v57 = vsel %vm994_vm2, %v996_v53, %v998_v54  ;;  %v1006_v61 = vrot.slane %v2060_v23, 2  ;;  %v2147_v62 = vsel %vm994_vm2, %v1000_v55, %v1001_v58  ;;  %v1008_v1 = vrot.slane %v355_v40, 2  ;;  %s2772_s10 = sld [smem:[#allocation7 + $0x6]] }
  0x6d   : > { %2940 = vst [vmem:[#allocation22_spill] sm:$0xff] %v2137_v57  ;;  %2941 = vst [vmem:[#allocation23_spill] sm:$0xff] %v2147_v62  ;;  %v2150_v63 = vsel %vm994_vm2, %v1001_v58, %v1003_v59  ;;  %v1010_v5 = vrot.slane %v2069_v26, 2  ;;  %v1011_v8 = vrot.slane %v2072_v27, 2  ;;  %v1013_v9 = vrot.slane %v356_v48, 2  ;;  %s2799_s1 = sld [smem:[#allocation7 + $0x7]] }
  0x6e   : > { %417 = vrot.lane.b32.xlu0 %v2069_v26, %s1815_s25  ;;  %420 = vrot.lane.b32.xlu1 %v2072_v27, %s1815_s25  ;;  %2942 = vst [vmem:[#allocation24_spill] sm:$0xff] %v2150_v63  ;;  %v2157_v3 = vsel %vm994_vm2, %v1005_v60, %v1006_v61  ;;  %v2160_v4 = vsel %vm994_vm2, %v1006_v61, %v1008_v1  ;;  %s1481_s2 = sld [smem:[#allocation7 + $0x8]]  ;;  %vm1296_vm1 = vcmask 130048  }
  0x6f   : > { %v2169_v16 = vsel %vm994_vm2, %v1010_v5, %v1011_v8  ;;  %v2172_v17 = vsel %vm994_vm2, %v1011_v8, %v1013_v9 }
  0x72   : > { %719 = vrot.lane.b32.xlu0 %v2084_v34, %s1815_s25  ;;  %722 = vrot.lane.b32.xlu1 %v2087_v35, %s1815_s25 }
  0x76   : > { %725 = vrot.lane.b32.xlu0 %v2098_v41, %s1815_s25  ;;  %728 = vrot.lane.b32.xlu1 %v2101_v42, %s1815_s25 }
  0x7a   : > { %731 = vrot.lane.b32.xlu0 %v2108_v44, %s1815_s25  ;;  %734 = vrot.lane.b32.xlu1 %v2111_v45, %s1815_s25 }
  0x7e   : > { %737 = vrot.lane.b32.xlu0 %v2122_v51, %s1815_s25  ;;  %740 = vrot.lane.b32.xlu1 %v2125_v52, %s1815_s25 }
  0x82   : > { %1023 = vrot.lane.b32.xlu0 %v2134_v56, %s1815_s25  ;;  %1026 = vrot.lane.b32.xlu1 %v2137_v57, %s1815_s25 }
  0x86   : > { %1029 = vrot.lane.b32.xlu0 %v2147_v62, %s1815_s25  ;;  %1032 = vrot.lane.b32.xlu1 %v2150_v63, %s1815_s25 }
  0x8a   : > { %1035 = vrot.lane.b32.xlu0 %v2157_v3, %s1815_s25  ;;  %1038 = vrot.lane.b32.xlu1 %v2160_v4, %s1815_s25 }
  0x8e   : > { %1041 = vrot.lane.b32.xlu0 %v2169_v16, %s1815_s25  ;;  %1044 = vrot.lane.b32.xlu1 %v2172_v17, %s1815_s25 }
  0xd4   : > { %v400_v19 = vpop.permute.xlu0 %399  ;;  %v406_v21 = vpop.permute.xlu1 %405 }
  0xd5   : > { %v401_v24 = vsel %vm398_vm3, %v400_v19, %v2024_v11  ;;  %v407_v25 = vsel %vm398_vm3, %v406_v21, %v2027_v12 }
  0xd6   : > { %423 = vrot.lane.b32.xlu0 %v401_v24, %s1815_s25 }
  0xd8   : > { %v403_v28 = vpop.permute.xlu0 %402  ;;  %v409_v29 = vpop.permute.xlu1 %408 }
  0xd9   : > { %v404_v30 = vsel %vm398_vm3, %v403_v28, %v2037_v14  ;;  %v410_v31 = vsel %vm398_vm3, %v409_v29, %v2040_v15 }
  0xda   : > { %425 = vrot.lane.b32.xlu1 %v404_v30, %s1815_s25  ;;  %427 = vrot.lane.b32.xlu0 %v407_v25, %s1815_s25 }
  0xdc   : > { %v412_v32 = vpop.permute.xlu0 %411  ;;  %v415_v33 = vpop.permute.xlu1 %414 }
  0xdd   : > { %v413_v36 = vsel %vm398_vm3, %v412_v32, %v2057_v22  ;;  %v416_v37 = vsel %vm398_vm3, %v415_v33, %v2060_v23 }
  0xde   : > { %429 = vrot.lane.b32.xlu1 %v410_v31, %s1815_s25  ;;  %431 = vrot.lane.b32.xlu0 %v413_v36, %s1815_s25 }
  0xe0   : > { %v418_v38 = vpop.permute.xlu0 %417  ;;  %v421_v39 = vpop.permute.xlu1 %420 }
  0xe1   : > { %v419_v40 = vsel %vm398_vm3, %v418_v38, %v2069_v26  ;;  %v422_v43 = vsel %vm398_vm3, %v421_v39, %v2072_v27 }
  0xe2   : > { %433 = vrot.lane.b32.xlu1 %v416_v37, %s1815_s25  ;;  %435 = vrot.lane.b32.xlu0 %v419_v40, %s1815_s25 }
  0xe4   : > { %v720_v46 = vpop.permute.xlu0 %719  ;;  %v723_v47 = vpop.permute.xlu1 %722 }
  0xe5   : > { %v721_v48 = vsel %vm398_vm3, %v720_v46, %v2084_v34  ;;  %v724_v49 = vsel %vm398_vm3, %v723_v47, %v2087_v35 }
  0xe6   : > { %437 = vrot.lane.b32.xlu1 %v422_v43, %s1815_s25  ;;  %743 = vrot.lane.b32.xlu0 %v721_v48, %s1815_s25 }
  0xe8   : > { %v726_v50 = vpop.permute.xlu0 %725  ;;  %v729_v53 = vpop.permute.xlu1 %728 }
  0xe9   : > { %v727_v54 = vsel %vm398_vm3, %v726_v50, %v2098_v41  ;;  %v730_v55 = vsel %vm398_vm3, %v729_v53, %v2101_v42 }
  0xea   : > { %745 = vrot.lane.b32.xlu1 %v724_v49, %s1815_s25  ;;  %747 = vrot.lane.b32.xlu0 %v727_v54, %s1815_s25 }
  0xec   : > { %v732_v58 = vpop.permute.xlu0 %731  ;;  %v735_v59 = vpop.permute.xlu1 %734 }
  0xed   : > { %v733_v60 = vsel %vm398_vm3, %v732_v58, %v2108_v44  ;;  %v736_v61 = vsel %vm398_vm3, %v735_v59, %v2111_v45 }
  0xee   : > { %749 = vrot.lane.b32.xlu1 %v730_v55, %s1815_s25  ;;  %751 = vrot.lane.b32.xlu0 %v733_v60, %s1815_s25 }
  0xf0   : > { %v738_v1 = vpop.permute.xlu0 %737  ;;  %v741_v5 = vpop.permute.xlu1 %740 }
  0xf1   : > { %v739_v8 = vsel %vm398_vm3, %v738_v1, %v2122_v51  ;;  %v742_v9 = vsel %vm398_vm3, %v741_v5, %v2125_v52 }
  0xf2   : > { %753 = vrot.lane.b32.xlu1 %v736_v61, %s1815_s25  ;;  %755 = vrot.lane.b32.xlu0 %v739_v8, %s1815_s25 }
  0xf4   : > { %v1024_v19 = vpop.permute.xlu0 %1023  ;;  %v1027_v21 = vpop.permute.xlu1 %1026 }
  0xf5   : > { %v1025_v24 = vsel %vm398_vm3, %v1024_v19, %v2134_v56  ;;  %v1028_v25 = vsel %vm398_vm3, %v1027_v21, %v2137_v57 }
  0xf6   : > { %757 = vrot.lane.b32.xlu1 %v742_v9, %s1815_s25  ;;  %1047 = vrot.lane.b32.xlu0 %v1025_v24, %s1815_s25 }
  0xf8   : > { %v1030_v28 = vpop.permute.xlu0 %1029  ;;  %v1033_v29 = vpop.permute.xlu1 %1032 }
  0xf9   : > { %v1031_v30 = vsel %vm398_vm3, %v1030_v28, %v2147_v62  ;;  %v1034_v31 = vsel %vm398_vm3, %v1033_v29, %v2150_v63 }
  0xfa   : > { %1049 = vrot.lane.b32.xlu1 %v1028_v25, %s1815_s25  ;;  %1051 = vrot.lane.b32.xlu0 %v1031_v30, %s1815_s25 }
  0xfc   : > { %v1036_v32 = vpop.permute.xlu0 %1035  ;;  %v1039_v33 = vpop.permute.xlu1 %1038 }
  0xfd   : > { %v1037_v36 = vsel %vm398_vm3, %v1036_v32, %v2157_v3  ;;  %v1040_v37 = vsel %vm398_vm3, %v1039_v33, %v2160_v4 }
  0xfe   : > { %1053 = vrot.lane.b32.xlu1 %v1034_v31, %s1815_s25  ;;  %1055 = vrot.lane.b32.xlu0 %v1037_v36, %s1815_s25 }
 0x100   : > { %v1042_v38 = vpop.permute.xlu0 %1041  ;;  %v1045_v39 = vpop.permute.xlu1 %1044 }
 0x101   : > { %v1043_v40 = vsel %vm398_vm3, %v1042_v38, %v2169_v16  ;;  %v1046_v43 = vsel %vm398_vm3, %v1045_v39, %v2172_v17 }
 0x102   : > { %1057 = vrot.lane.b32.xlu1 %v1040_v37, %s1815_s25  ;;  %1059 = vrot.lane.b32.xlu0 %v1043_v40, %s1815_s25 }
 0x106   : > { %1061 = vrot.lane.b32.xlu1 %v1046_v43, %s1815_s25 }
 0x148   : > { %v424_v46 = vpop.permute.xlu0 %423 }
 0x149   : > { %v439_v47 = vsel %vm398_vm3, %v424_v46, %v2024_v11 }
 0x14a   : > { %457 = vrot.lane.b32.xlu0 %v439_v47, %s1816_s9 }
 0x14c   : > { %v426_v48 = vpop.permute.xlu1 %425  ;;  %v428_v49 = vpop.permute.xlu0 %427 }
 0x14d   : > { %v440_v50 = vsel %vm398_vm3, %v426_v48, %v2037_v14  ;;  %v441_v53 = vsel %vm398_vm3, %v428_v49, %v2027_v12 }
 0x14e   : > { %459 = vrot.lane.b32.xlu1 %v440_v50, %s1816_s9  ;;  %474 = vrot.lane.b32.xlu0 %v441_v53, %s1816_s9 }
 0x150   : > { %v430_v54 = vpop.permute.xlu1 %429  ;;  %v432_v55 = vpop.permute.xlu0 %431 }
 0x151   : > { %v442_v58 = vsel %vm398_vm3, %v430_v54, %v2040_v15  ;;  %v443_v59 = vsel %vm398_vm3, %v432_v55, %v2057_v22 }
 0x152   : > { %476 = vrot.lane.b32.xlu1 %v442_v58, %s1816_s9  ;;  %491 = vrot.lane.b32.xlu0 %v443_v59, %s1816_s9 }
 0x154   : > { %v434_v60 = vpop.permute.xlu1 %433  ;;  %v436_v1 = vpop.permute.xlu0 %435 }
 0x155   : > { %v444_v61 = vsel %vm398_vm3, %v434_v60, %v2060_v23  ;;  %v445_v5 = vsel %vm398_vm3, %v436_v1, %v2069_v26 }
 0x156   : > { %493 = vrot.lane.b32.xlu1 %v444_v61, %s1816_s9  ;;  %601 = vrot.lane.b32.xlu0 %v439_v47, %s1817_s12 }
 0x158   : > { %v438_v8 = vpop.permute.xlu1 %437  ;;  %v744_v9 = vpop.permute.xlu0 %743 }
 0x159   : > { %v446_v19 = vsel %vm398_vm3, %v438_v8, %v2072_v27  ;;  %v759_v25 = vsel %vm398_vm3, %v744_v9, %v2084_v34 }
 0x15a   : > { %603 = vrot.lane.b32.xlu1 %v440_v50, %s1817_s12  ;;  %615 = vrot.lane.b32.xlu0 %v441_v53, %s1817_s12 }
 0x15c   : > { %v746_v21 = vpop.permute.xlu1 %745  ;;  %v748_v24 = vpop.permute.xlu0 %747 }
 0x15d   : > { %v760_v30 = vsel %vm398_vm3, %v746_v21, %v2087_v35  ;;  %v761_v31 = vsel %vm398_vm3, %v748_v24, %v2098_v41  ;;  %v554_v21 = vsub.f32 %v2007_v2, %v2027_v12  ;;  %v547_v24 = vsub.f32 %v2013_v6, %v2037_v14 }
 0x15e   : > { %617 = vrot.lane.b32.xlu1 %v442_v58, %s1817_s12  ;;  %508 = vrot.lane.b32.xlu0 %v445_v5, %s1816_s9 }
 0x160   : > { %v750_v28 = vpop.permute.xlu1 %749  ;;  %v752_v29 = vpop.permute.xlu0 %751 }
 0x161   : > { %v762_v33 = vsel %vm398_vm3, %v750_v28, %v2101_v42  ;;  %v763_v36 = vsel %vm398_vm3, %v752_v29, %v2108_v44  ;;  %v556_v29 = vmul.f32 %v554_v21, %v554_v21 }
 0x162   : > { %510 = vrot.lane.b32.xlu1 %v446_v19, %s1816_s9  ;;  %629 = vrot.lane.b32.xlu0 %v443_v59, %s1817_s12 }
 0x164   : > { %v754_v32 = vpop.permute.xlu1 %753  ;;  %v756_v37 = vpop.permute.xlu0 %755 }
 0x165   : > { %v764_v38 = vsel %vm398_vm3, %v754_v32, %v2111_v45  ;;  %v765_v39 = vsel %vm398_vm3, %v756_v37, %v2122_v51  ;;  %v2360_v37 = vstv %s1471_s5 }
 0x166   : > { %631 = vrot.lane.b32.xlu1 %v444_v61, %s1817_s12  ;;  %643 = vrot.lane.b32.xlu0 %v445_v5, %s1817_s12 }
 0x168   : > { %v758_v40 = vpop.permute.xlu1 %757  ;;  %v1048_v46 = vpop.permute.xlu0 %1047 }
 0x169   : > { %v766_v43 = vsel %vm398_vm3, %v758_v40, %v2125_v52  ;;  %v1063_v48 = vsel %vm398_vm3, %v1048_v46, %v2134_v56 }
 0x16a   : > { %645 = vrot.lane.b32.xlu1 %v446_v19, %s1817_s12  ;;  %775 = vrot.lane.b32.xlu0 %v759_v25, %s1816_s9  ;;  %v546_v19 = vsub.f32 %v2003_v0, %v2024_v11 }
 0x16c   : > { %v1050_v47 = vpop.permute.xlu1 %1049  ;;  %v1052_v49 = vpop.permute.xlu0 %1051  ;;  %v548_v28 = vmul.f32 %v546_v19, %v546_v19  ;;  %v866_v19 = vsub.f32 %v2007_v2, %v2098_v41 }
 0x16d   : > { %v1064_v50 = vsel %vm398_vm3, %v1050_v47, %v2137_v57  ;;  %v1065_v53 = vsel %vm398_vm3, %v1052_v49, %v2147_v62 }
 0x16e   : > { %777 = vrot.lane.b32.xlu1 %v760_v30, %s1816_s9  ;;  %791 = vrot.lane.b32.xlu0 %v761_v31, %s1816_s9 }
 0x170   : > { %v1054_v54 = vpop.permute.xlu1 %1053  ;;  %v1056_v55 = vpop.permute.xlu0 %1055 }
 0x171   : > { %v1066_v58 = vsel %vm398_vm3, %v1054_v54, %v2150_v63  ;;  %v1067_v60 = vsel %vm398_vm3, %v1056_v55, %v2157_v3  ;;  %v2377_v55 = vstv %s1473_s21 }
 0x172   : > { %793 = vrot.lane.b32.xlu1 %v762_v33, %s1816_s9  ;;  %807 = vrot.lane.b32.xlu0 %v763_v36, %s1816_s9 }
 0x174   : > { %v1058_v59 = vpop.permute.xlu1 %1057  ;;  %v1060_v61 = vpop.permute.xlu0 %1059 }
 0x175   : > { %v1068_v1 = vsel %vm398_vm3, %v1058_v59, %v2160_v4  ;;  %v1069_v5 = vsel %vm398_vm3, %v1060_v61, %v2169_v16 }
 0x176   : > { %809 = vrot.lane.b32.xlu1 %v764_v38, %s1816_s9  ;;  %823 = vrot.lane.b32.xlu0 %v765_v39, %s1816_s9 }
 0x178   : > { %v1062_v8 = vpop.permute.xlu1 %1061 }
 0x179   : > { %v1070_v9 = vsel %vm398_vm3, %v1062_v8, %v2172_v17 }
 0x17a   : > { %825 = vrot.lane.b32.xlu1 %v766_v43, %s1816_s9  ;;  %911 = vrot.lane.b32.xlu0 %v759_v25, %s1817_s12  ;;  %v555_v25 = vsub.f32 %v2016_v7, %v2040_v15 }
 0x17c   : > { %v557_v32 = vmul.f32 %v555_v25, %v555_v25 }
 0x17e   : > { %913 = vrot.lane.b32.xlu1 %v760_v30, %s1817_s12  ;;  %925 = vrot.lane.b32.xlu0 %v761_v31, %s1817_s12  ;;  %v562_v30 = vsub.f32 %v2021_v10, %v2057_v22  ;;  %v549_v31 = vmul.f32 %v547_v24, %v547_v24  ;;  %v559_v47 = vmul.f32 %v557_v32, %v2360_v37 }
 0x180   : > { %v564_v40 = vmul.f32 %v562_v30, %v562_v30  ;;  %v859_v30 = vsub.f32 %v2013_v6, %v2087_v35 }
 0x182   : > { %927 = vrot.lane.b32.xlu1 %v762_v33, %s1817_s12  ;;  %939 = vrot.lane.b32.xlu0 %v763_v36, %s1817_s12  ;;  %v563_v33 = vsub.f32 %v2030_v13, %v2060_v23  ;;  %v2358_v36 = vstv %s357_s13  ;;  %v571_v23 = vsub.f32 %v2049_v20, %v2072_v27  ;;  %s1818_s13 = smov [#allocation11]  }
 0x183   : > { %v551_v22 = vmul.f32 %v549_v31, %v2358_v36  ;;  %s1719_s5 = sshll.u32 %s1818_s13, 4  ;;  %s1720_s5 = int_to_ptr.vmem [resolvable:$false] %s1719_s5 }
 0x184   : > { %v565_v46 = vmul.f32 %v563_v33, %v563_v33  ;;  %p1722_p12 = scmp.lt.s32.totalorder %s2857_s8, %s1720_s5 }
 0x185   : > { %v561_v59 = vadd.f32 %v559_v47, %v551_v22  ;;  %v868_v22 = vmul.f32 %v866_v19, %v866_v19  ;;  %v867_v47 = vsub.f32 %v2016_v7, %v2101_v42 }
 0x186   : > { %941 = vrot.lane.b32.xlu1 %v764_v38, %s1817_s12  ;;  %1079 = vrot.lane.b32.xlu0 %v1063_v48, %s1816_s9  ;;  %v550_v38 = vmul.f32 %v548_v28, %v2358_v36 }
 0x18a   : > { %1081 = vrot.lane.b32.xlu1 %v1064_v50, %s1816_s9  ;;  %1095 = vrot.lane.b32.xlu0 %v1065_v53, %s1816_s9 }
 0x18e   : > { %1097 = vrot.lane.b32.xlu1 %v1066_v58, %s1816_s9  ;;  %953 = vrot.lane.b32.xlu0 %v765_v39, %s1817_s12  ;;  %v558_v39 = vmul.f32 %v556_v29, %v2360_v37 }
 0x192   : > { %955 = vrot.lane.b32.xlu1 %v766_v43, %s1817_s12  ;;  %1111 = vrot.lane.b32.xlu0 %v1067_v60, %s1816_s9  ;;  %v570_v43 = vsub.f32 %v2045_v18, %v2069_v26 }
 0x194   : > { %v572_v26 = vmul.f32 %v570_v43, %v570_v43 }
 0x196   : > { %1113 = vrot.lane.b32.xlu1 %v1068_v1, %s1816_s9  ;;  %1127 = vrot.lane.b32.xlu0 %v1069_v5, %s1816_s9  ;;  %v574_v24 = vmul.f32 %v572_v26, %v2377_v55 }
 0x19a   : > { %1129 = vrot.lane.b32.xlu1 %v1070_v9, %s1816_s9  ;;  %1215 = vrot.lane.b32.xlu0 %v1063_v48, %s1817_s12 }
 0x19e   : > { %1217 = vrot.lane.b32.xlu1 %v1064_v50, %s1817_s12  ;;  %1229 = vrot.lane.b32.xlu0 %v1065_v53, %s1817_s12  ;;  %v2374_v50 = vstv %s1472_s23  ;;  %v560_v53 = vadd.f32 %v558_v39, %v550_v38  ;;  %s1721_s23 = scalar_lea.vmem %s1720_s5, 1024 }
 0x19f   : > { %v566_v54 = vmul.f32 %v564_v40, %v2374_v50  ;;  %p1723_p11 = scmp.lt.s32.totalorder %s1721_s23, %s1715_s24 }
 0x1a1   : > { %v568_v21 = vadd.f32 %v566_v54, %v560_v53  ;;  %p1724_p1 = por %p1723_p11, %p1722_p12 }
 0x1a2   : > { %1231 = vrot.lane.b32.xlu1 %v1066_v58, %s1817_s12  ;;  %1243 = vrot.lane.b32.xlu0 %v1067_v60, %s1817_s12  ;;  %v567_v58 = vmul.f32 %v565_v46, %v2374_v50  ;;  %v573_v60 = vmul.f32 %v571_v23, %v571_v23  ;;  %v874_v23 = vsub.f32 %v2021_v10, %v2108_v44 }
 0x1a3   : > { %v576_v26 = vadd.f32 %v574_v24, %v568_v21  ;;  %v870_v44 = vmul.f32 %v868_v22, %v2360_v37  ;;  %v875_v21 = vsub.f32 %v2030_v13, %v2111_v45  ;;  %p1725_p0 = pnand %p1724_p1, %p1718_p4 }
 0x1a4   : > { %v569_v28 = vadd.f32 %v567_v58, %v561_v59  ;;  %v575_v29 = vmul.f32 %v573_v60, %v2377_v55  ;;  %v861_v59 = vmul.f32 %v859_v30, %v859_v30  ;;  %v876_v24 = vmul.f32 %v874_v23, %v874_v23 }
 0x1a6   : > { %1245 = vrot.lane.b32.xlu1 %v1068_v1, %s1817_s12  ;;  %1257 = vrot.lane.b32.xlu0 %v1069_v5, %s1817_s12  ;;  %v577_v58 = vadd.f32 %v575_v29, %v569_v28  ;;  %v878_v23 = vmul.f32 %v876_v24, %v2374_v50  ;;  %v371_v24 = vlaneseq }
 0x1a8   : > { %v580_v45 = vmul.f32 1.442695, %v577_v58 }
 0x1aa   : > { %1259 = vrot.lane.b32.xlu1 %v1070_v9, %s1817_s12  ;;  %v858_v9 = vsub.f32 %v2003_v0, %v2084_v34 }
 0x1ac   : > { %v860_v46 = vmul.f32 %v858_v9, %v858_v9 }
 0x1bc   : > { %v2370_v48 = vpop.permute.xlu0 %457 }
 0x1bd   : > { %v463_v49 = vsub.f32 %v2003_v0, %v2370_v48 }
 0x1bf   : > { %v465_v61 = vmul.f32 %v463_v49, %v463_v49 }
 0x1c0   : > { %v2380_v1 = vpop.permute.xlu1 %459  ;;  %v2382_v27 = vpop.permute.xlu0 %474 }
 0x1c1   : > { %v464_v5 = vsub.f32 %v2013_v6, %v2380_v1  ;;  %v480_v8 = vsub.f32 %v2007_v2, %v2382_v27  ;;  %v468_v31 = vmul.f32 %v2358_v36, %v465_v61 }
 0x1c3   : > { %v482_v25 = vmul.f32 %v480_v8, %v480_v8  ;;  %v466_v38 = vmul.f32 %v464_v5, %v464_v5 }
 0x1c4   : > { %v2397_v32 = vpop.permute.xlu1 %476  ;;  %v492_v33 = vpop.permute.xlu0 %491 }
 0x1c5   : > { %v485_v39 = vmul.f32 %v2360_v37, %v482_v25  ;;  %v481_v40 = vsub.f32 %v2016_v7, %v2397_v32  ;;  %v497_v43 = vsub.f32 %v2021_v10, %v492_v33  ;;  %v469_v5 = vmul.f32 %v2358_v36, %v466_v38 }
 0x1c6   : > { %v862_v25 = vmul.f32 %v860_v46, %v2358_v36  ;;  %v882_v33 = vsub.f32 %v2045_v18, %v2122_v51  ;;  %v863_v46 = vmul.f32 %v861_v59, %v2358_v36 }
 0x1c7   : > { %v487_v49 = vadd.f32 %v485_v39, %v468_v31  ;;  %v483_v53 = vmul.f32 %v481_v40, %v481_v40  ;;  %v499_v54 = vmul.f32 %v497_v43, %v497_v43  ;;  %v869_v31 = vmul.f32 %v867_v47, %v867_v47 }
 0x1c8   : > { %v494_v60 = vpop.permute.xlu1 %493  ;;  %v2407_v61 = vpop.permute.xlu0 %601  ;;  %v578_v43 = vmul.f32 1.442695, %v576_v26  ;;  %v877_v47 = vmul.f32 %v875_v21, %v875_v21 }
 0x1c9   : > { %v486_v8 = vmul.f32 %v2360_v37, %v483_v53  ;;  %v502_v9 = vmul.f32 %v2374_v50, %v499_v54  ;;  %v498_v19 = vsub.f32 %v2030_v13, %v494_v60  ;;  %v871_v22 = vmul.f32 %v869_v31, %v2360_v37 }
 0x1ca   : > { %v884_v54 = vmul.f32 %v882_v33, %v882_v33  ;;  %1585 = vpow2.f32 %v578_v43  ;;  %v879_v26 = vmul.f32 %v877_v47, %v2374_v50  ;;  %v607_v58 = vsub.f32 %v2003_v0, %v2407_v61 }
 0x1cb   : > { %v488_v28 = vadd.f32 %v486_v8, %v469_v5  ;;  %v504_v29 = vadd.f32 %v502_v9, %v487_v49  ;;  %v500_v30 = vmul.f32 %v498_v19, %v498_v19  ;;  %v872_v49 = vadd.f32 %v870_v44, %v862_v25 }
 0x1cc   : > { %v2419_v38 = vpop.permute.xlu1 %603  ;;  %v2421_v39 = vpop.permute.xlu0 %615  ;;  %v873_v59 = vadd.f32 %v871_v22, %v863_v46  ;;  %1587 = vpow2.f32 %v580_v45  ;;  %v886_v44 = vmul.f32 %v884_v54, %v2377_v55  ;;  %v883_v31 = vsub.f32 %v2049_v20, %v2125_v52 }
 0x1cd   : > { %v503_v40 = vmul.f32 %v2374_v50, %v500_v30  ;;  %v621_v51 = vsub.f32 %v2007_v2, %v2421_v39  ;;  %v880_v9 = vadd.f32 %v878_v23, %v872_v49  ;;  %v608_v33 = vsub.f32 %v2013_v6, %v2419_v38 }
 0x1ce   : > { %v2445_v22 = vadd.f32 %v879_v26, %v873_v59  ;;  %v1162_v47 = vsub.f32 %v2003_v0, %v2134_v56  ;;  %v1163_v52 = vsub.f32 %v2013_v6, %v2137_v57  ;;  %v609_v45 = vmul.f32 %v607_v58, %v607_v58 }
 0x1cf   : > { %v505_v53 = vadd.f32 %v503_v40, %v488_v28  ;;  %v623_v21 = vmul.f32 %v621_v51, %v621_v51 }
 0x1d0   : > { %v2429_v60 = vpop.permute.xlu1 %617  ;;  %v509_v5 = vpop.permute.xlu0 %508  ;;  %v1164_v35 = vmul.f32 %v1162_v47, %v1162_v47  ;;  %v2481_v47 = vmul.f32 %v1163_v52, %v1163_v52 }
 0x1d1   : > { %v514_v8 = vsub.f32 %v2045_v18, %v509_v5  ;;  %v622_v19 = vsub.f32 %v2016_v7, %v2429_v60  ;;  %v885_v5 = vmul.f32 %v883_v31, %v883_v31 }
 0x1d3   : > { %v516_v25 = vmul.f32 %v514_v8, %v514_v8  ;;  %v624_v23 = vmul.f32 %v622_v19, %v622_v19  ;;  %v1170_v8 = vsub.f32 %v2007_v2, %v2147_v62  ;;  %v2461_v19 = vshrl.u32 %v371_v24, 7 }
 0x1d4   : > { %v511_v28 = vpop.permute.xlu1 %510  ;;  %v630_v30 = vpop.permute.xlu0 %629 }
 0x1d5   : > { %v519_v40 = vmul.f32 %v2377_v55, %v516_v25  ;;  %v515_v43 = vsub.f32 %v2049_v20, %v511_v28  ;;  %v635_v46 = vsub.f32 %v2021_v10, %v630_v30  ;;  %v625_v25 = vmul.f32 %v623_v21, %v2360_v37 }
 0x1d6   : > { %v2454_v28 = vand.u32 127, %v371_v24  ;;  %v610_v30 = vmul.f32 %v608_v33, %v608_v33 }
 0x1d7   : > { %v521_v49 = vadd.f32 %v519_v40, %v504_v29  ;;  %v517_v54 = vmul.f32 %v515_v43, %v515_v43  ;;  %v637_v51 = vmul.f32 %v635_v46, %v635_v46  ;;  %v611_v29 = vmul.f32 %v609_v45, %v2358_v36 }
 0x1d8   : > { %v632_v26 = vpop.permute.xlu1 %631  ;;  %v644_v59 = vpop.permute.xlu0 %643  ;;  %v626_v40 = vmul.f32 %v624_v23, %v2360_v37  ;;  %v888_v46 = vadd.f32 %v886_v44, %v880_v9  ;;  %v612_v24 = vmul.f32 %v610_v30, %v2358_v36  ;;  %v2478_v23 = vadd.s32 4294967295, %v2461_v19 }
 0x1d9   : > { %v523_v56 = vmul.f32 1.442695, %v521_v49  ;;  %v520_v42 = vmul.f32 %v2377_v55, %v517_v54  ;;  %v636_v58 = vsub.f32 %v2030_v13, %v632_v26  ;;  %v639_v31 = vmul.f32 %v637_v51, %v2374_v50  ;;  %v1586_v9 = vpop.eup %1585 }
 0x1da   : > { %v649_v21 = vsub.f32 %v2045_v18, %v644_v59  ;;  %v627_v49 = vadd.f32 %v625_v25, %v611_v29  ;;  %v379_v54 = vadd.s32 4294967295, %v2454_v28  ;;  %v628_v44 = vadd.f32 %v626_v40, %v612_v24  ;;  %v1588_v30 = vpop.eup %1587 }
 0x1db   : > { %1589 = vpow2.f32 %v523_v56  ;;  %v522_v43 = vadd.f32 %v520_v42, %v505_v53  ;;  %v638_v33 = vmul.f32 %v636_v58, %v636_v58  ;;  %v1172_v58 = vmul.f32 %v1170_v8, %v1170_v8 }
 0x1dc   : > { %v651_v26 = vmul.f32 %v649_v21, %v649_v21  ;;  %v646_v57 = vpop.permute.xlu1 %645  ;;  %v2467_v45 = vpop.permute.xlu0 %775  ;;  %v641_v42 = vadd.f32 %v639_v31, %v627_v49  ;;  %vm380_vm4 = vcmp.ge.s32.totalorder %v379_v54, 0  ;;  %vm381_vm5 = vcmp.lt.s32.totalorder %v379_v54, 16 }
 0x1dd   : > { %v525_v62 = vmul.f32 1.442695, %v522_v43  ;;  %v640_v51 = vmul.f32 %v638_v33, %v2374_v50  ;;  %v650_v59 = vsub.f32 %v2049_v20, %v646_v57  ;;  %v781_v53 = vsub.f32 %v2003_v0, %v2467_v45  ;;  %vm2506_vm8 = vmand %vm380_vm4, %vm381_vm5 }
 0x1de   : > { %v653_v56 = vmul.f32 %v651_v26, %v2377_v55  ;;  %v887_v57 = vmul.f32 %v885_v5, %v2377_v55  ;;  %vm384_vm6 = vcmp.lt.s32.totalorder %v2454_v28, 16  ;;  %vm392_vm7 = vcmp.ge.s32.totalorder %v2478_v23, 0 }
 0x1df   : > { %1591 = vpow2.f32 %v525_v62  ;;  %v652_v25 = vmul.f32 %v650_v59, %v650_v59  ;;  %v642_v0 = vadd.f32 %v640_v51, %v628_v44  ;;  %v582_v62 = vstv %s2459_s7  ;;  %vm2517_vm9 = vmand %vm392_vm7, %vm384_vm6 }
 0x1e0   : > { %v655_v29 = vadd.f32 %v653_v56, %v641_v42  ;;  %v2483_v31 = vpop.permute.xlu1 %777  ;;  %v2485_v21 = vpop.permute.xlu0 %791  ;;  %v783_v49 = vmul.f32 %v781_v53, %v781_v53  ;;  %v2493_v8 = vmul.f32 1.442695, %v888_v46  ;;  %v1171_v26 = vsub.f32 %v2016_v7, %v2150_v63  ;;  %vm453_vm10 = vmand %vm392_vm7, %vm2506_vm8 }
 0x1e1   : > { %v654_v40 = vmul.f32 %v652_v25, %v2377_v55  ;;  %v797_v43 = vsub.f32 %v2007_v2, %v2485_v21  ;;  %v782_v2 = vsub.f32 %v2013_v6, %v2483_v31  ;;  %v2502_v59 = vmul.f32 %v1164_v35, %v2358_v36 }
 0x1e2   : > { %v657_v33 = vmul.f32 1.442695, %v655_v29  ;;  %v583_v46 = vmul.f32 %v1586_v9, %v582_v62  ;;  %v527_v44 = vstv %s2472_s11  ;;  %v785_v35 = vmul.f32 %v783_v49, %v2358_v36 }
 0x1e3   : > { %v656_v52 = vadd.f32 %v654_v40, %v642_v0  ;;  %v799_v5 = vmul.f32 %v797_v43, %v797_v43  ;;  %v2527_v25 = vadd.f32 %v887_v57, %v2445_v22  ;;  %v2532_v40 = vmul.f32 %v1171_v26, %v1171_v26 }
 0x1e4   : > { %1593 = vpow2.f32 %v657_v33  ;;  %v2499_v24 = vpop.permute.xlu1 %793  ;;  %v808_v51 = vpop.permute.xlu0 %807  ;;  %v1178_v43 = vsub.f32 %v2021_v10, %v2157_v3  ;;  %v784_v33 = vmul.f32 %v782_v2, %v782_v2 }
 0x1e5   : > { %v659_v56 = vmul.f32 1.442695, %v656_v52  ;;  %v798_v53 = vsub.f32 %v2016_v7, %v2499_v24  ;;  %v801_v54 = vmul.f32 %v799_v5, %v2360_v37  ;;  %v813_v9 = vsub.f32 %v2021_v10, %v808_v51 }
 0x1e6   : > { %v2530_v7 = vmul.f32 %v1172_v58, %v2360_v37  ;;  %v585_v58 = vsel %vm2517_vm9, %v583_v46, 0.0  ;;  %v584_v51 = vmul.f32 %v1588_v30, %v582_v62  ;;  %v2545_v10 = vadd.s32 1, %v2454_v28 }
 0x1e7   : > { %1595 = vpow2.f32 %v659_v56  ;;  %v800_v29 = vmul.f32 %v798_v53, %v798_v53  ;;  %v815_v49 = vmul.f32 %v813_v9, %v813_v9  ;;  %v803_v3 = vadd.f32 %v801_v54, %v785_v35 }
 0x1e8   : > { %v1590_v0 = vpop.eup %1589  ;;  %v810_v22 = vpop.permute.xlu1 %809  ;;  %vm388_vm11 = vcmp.lt.s32.totalorder %v2545_v10, 16 }
 0x1e9   : > { %v824_v57 = vpop.permute.xlu0 %823  ;;  %v528_v52 = vmul.f32 %v1590_v0, %v527_v44  ;;  %v814_v5 = vsub.f32 %v2030_v13, %v810_v22  ;;  %v817_v56 = vmul.f32 %v815_v49, %v2374_v50  ;;  %v802_v2 = vmul.f32 %v800_v29, %v2360_v37  ;;  %vm599_vm12 = vmand %vm392_vm7, %vm388_vm11 }
 0x1ea   : > { %v829_v26 = vsub.f32 %v2045_v18, %v824_v57  ;;  %v786_v22 = vmul.f32 %v784_v33, %v2358_v36 }
 0x1eb   : > { %v530_v53 = vsel %vm453_vm10, %v528_v52, 0.0  ;;  %v816_v9 = vmul.f32 %v814_v5, %v814_v5  ;;  %v819_v30 = vadd.f32 %v817_v56, %v803_v3  ;;  %v587_v52 = vmul.f32 %v585_v58, %v2024_v11 }
 0x1ec   : > { %v831_v63 = vmul.f32 %v829_v26, %v829_v26  ;;  %v1592_v6 = vpop.eup %1591  ;;  %v532_v46 = vmul.f32 %v530_v53, %v2370_v48  ;;  %v534_v0 = vmul.f32 %v530_v53, %v2382_v27  ;;  %v826_v62 = vpop.permute.xlu1 %825  ;;  %v586_v48 = vsel %vm384_vm6, %v584_v51, 0.0 }
 0x1ed   : > { %v2552_v57 = vpop.permute.xlu0 %911  ;;  %v529_v35 = vmul.f32 %v1592_v6, %v527_v44  ;;  %v818_v54 = vmul.f32 %v816_v9, %v2374_v50  ;;  %v830_v29 = vsub.f32 %v2049_v20, %v826_v62  ;;  %v661_v27 = vstv %s2521_s29 }
 0x1ee   : > { %v833_v49 = vmul.f32 %v831_v63, %v2377_v55  ;;  %v804_v5 = vadd.f32 %v802_v2, %v786_v22  ;;  %v2566_v3 = vsub.f32 %v2030_v13, %v2160_v4  ;;  %v589_v20 = vmul.f32 %v585_v58, %v2027_v12 }
 0x1ef   : > { %v531_v33 = vsel %vm2506_vm8, %v529_v35, 0.0  ;;  %v832_v44 = vmul.f32 %v830_v29, %v830_v29  ;;  %v1180_v6 = vmul.f32 %v1178_v43, %v1178_v43  ;;  %v590_v2 = vmul.f32 %v586_v48, %v2040_v15 }
 0x1f0   : > { %v835_v26 = vadd.f32 %v833_v49, %v819_v30  ;;  %v533_v11 = vmul.f32 %v531_v33, %v2380_v1  ;;  %v535_v63 = vmul.f32 %v531_v33, %v2397_v32  ;;  %v2571_v51 = vpop.permute.xlu1 %913  ;;  %v820_v13 = vadd.f32 %v818_v54, %v804_v5  ;;  %v2585_v54 = vld [vmem:[%s1986_s28] sm:$0xff]  ;;  %v2590_v5 = vld [vmem:[%s1986_s28 + $0x10] sm:$0xff] }
 0x1f1   : > { %v2573_v56 = vpop.permute.xlu0 %925  ;;  %v1594_v9 = vpop.eup %1593  ;;  %v834_v12 = vmul.f32 %v832_v44, %v2377_v55  ;;  %v1186_v1 = vsub.f32 %v2045_v18, %v2169_v16  ;;  %v588_v32 = vmul.f32 %v586_v48, %v2037_v14  ;;  %v591_v43 = vadd.f32 %v587_v52, %v532_v46 }
 0x1f2   : > { %v837_v4 = vmul.f32 1.442695, %v835_v26  ;;  %v662_v22 = vmul.f32 %v1594_v9, %v661_v27  ;;  %v595_v30 = vadd.f32 %v585_v58, %v530_v53  ;;  %v593_v35 = vadd.f32 %v589_v20, %v534_v0 }
 0x1f3   : > { %v836_v62 = vadd.f32 %v834_v12, %v820_v13  ;;  %v917_v29 = vsub.f32 %v2585_v54, %v2552_v57  ;;  %v931_v14 = vsub.f32 %v2590_v5, %v2573_v56  ;;  %v592_v0 = vadd.f32 %v588_v32, %v533_v11 }
 0x1f4   : > { %1597 = vpow2.f32 %v837_v4  ;;  %v1596_v23 = vpop.eup %1595  ;;  %v664_v49 = vsel %vm599_vm12, %v662_v22, 0.0  ;;  %v2594_v15 = vpop.permute.xlu1 %927  ;;  %v594_v52 = vadd.f32 %v590_v2, %v535_v63  ;;  %v596_v26 = vadd.f32 %v586_v48, %v531_v33 }
 0x1f5   : > { %v940_v18 = vpop.permute.xlu0 %939  ;;  %v666_v16 = vmul.f32 %v664_v49, %v2407_v61  ;;  %v668_v58 = vmul.f32 %v664_v49, %v2421_v39  ;;  %v2598_v53 = vadd.f32 %v664_v49, %v595_v30  ;;  %v663_v46 = vmul.f32 %v1596_v23, %v661_v27  ;;  %v2611_v39 = vld [vmem:[%s1986_s28 + $0x20] sm:$0xff]  ;;  %v2633_v30 = vld [vmem:[%s1986_s28 + $0x18] sm:$0xff]  ;;  %v2646_v49 = vld [vmem:[%s1986_s28 + $0x28] sm:$0xff] }
 0x1f6   : > { %v839_v44 = vmul.f32 1.442695, %v836_v62  ;;  %v945_v27 = vsub.f32 %v2611_v39, %v940_v18  ;;  %v1176_v4 = vadd.f32 %v2530_v7, %v2502_v59  ;;  %v1182_v12 = vmul.f32 %v1180_v6, %v2374_v50 }
 0x1f7   : > { %v2604_v20 = vadd.f32 %v666_v16, %v591_v43  ;;  %v2606_v9 = vadd.f32 %v668_v58, %v593_v35  ;;  %v665_v61 = vsel %vm388_vm11, %v663_v46, 0.0  ;;  %v1188_v32 = vmul.f32 %v1186_v1, %v1186_v1  ;;  %v2655_v16 = vld [vmem:[%s1986_s28 + $0x38] sm:$0xff] }
 0x1f8   : > { %v667_v48 = vmul.f32 %v665_v61, %v2419_v38  ;;  %v669_v33 = vmul.f32 %v665_v61, %v2429_v60  ;;  %v2616_v11 = vadd.f32 %v665_v61, %v596_v26  ;;  %1599 = vpow2.f32 %v839_v44  ;;  %v942_v63 = vpop.permute.xlu1 %941  ;;  %v2628_v38 = vld [vmem:[%s1986_s28 + $0x8] sm:$0xff] }
 0x1f9   : > { %v2618_v13 = vpop.permute.xlu0 %1079  ;;  %v933_v2 = vmul.f32 %v931_v14, %v931_v14  ;;  %v918_v60 = vsub.f32 %v2628_v38, %v2571_v51  ;;  %v932_v59 = vsub.f32 %v2633_v30, %v2594_v15  ;;  %v892_v7 = vmul.f32 1.442695, %v2527_v25 }
 0x1fa   : > { %2947 = vst [vmem:[#allocation25_spill] sm:$0xff] %v2616_v11  ;;  %v2623_v22 = vadd.f32 %v667_v48, %v592_v0  ;;  %v2625_v43 = vadd.f32 %v669_v33, %v594_v52  ;;  %v1167_v6 = vmul.f32 %v2481_v47, %v2358_v36  ;;  %v919_v1 = vmul.f32 %v917_v29, %v917_v29 }
 0x1fb   : > { %v947_v62 = vmul.f32 %v945_v27, %v945_v27  ;;  %1601 = vpow2.f32 %v2493_v8  ;;  %v1175_v23 = vmul.f32 %v2532_v40, %v2360_v37  ;;  %v1181_v35 = vmul.f32 %v2566_v3, %v2566_v3 }
 0x1fc   : > { %v946_v14 = vsub.f32 %v2646_v49, %v942_v63  ;;  %v2649_v25 = vpop.permute.xlu1 %1081  ;;  %v1184_v47 = vadd.f32 %v1182_v12, %v1176_v4  ;;  %v1190_v29 = vmul.f32 %v1188_v32, %v2377_v55  ;;  %v1187_v8 = vsub.f32 %v2655_v16, %v2172_v17 }
 0x1fd   : > { %v2651_v18 = vpop.permute.xlu0 %1095  ;;  %v935_v40 = vmul.f32 %v933_v2, %v2360_v37  ;;  %v841_v58 = vstv %s2600_s30  ;;  %v920_v3 = vmul.f32 %v918_v60, %v918_v60  ;;  %v934_v46 = vmul.f32 %v932_v59, %v932_v59  ;;  %v2676_v60 = vld [vmem:[%s1986_s28 + $0x30] sm:$0xff]  ;;  %s1489_s28 = sshll.u32 %s1799_s18, 9  ;;  %s1302_s18 = scalar_lea.sflag [#allocation4], %s1982_s0 }
 0x1fe   : > { %2948 = vst [vmem:[#allocation26_spill] sm:$0xff] %v2651_v18  ;;  %v1085_v0 = vsub.f32 %v2585_v54, %v2618_v13  ;;  %1603 = vpow2.f32 %v892_v7  ;;  %v921_v26 = vmul.f32 %v919_v1, %v2358_v36  ;;  %v949_v44 = vmul.f32 %v947_v62, %v2374_v50  ;;  %s2855_s12 = scalar_lea.hbm %s2911_s4, %s1489_s28 }
 0x1ff   : > { %v2666_v27 = vadd.f32 %v1175_v23, %v1167_v6  ;;  %v2669_v17 = vmul.f32 %v1181_v35, %v2374_v50  ;;  %v948_v48 = vmul.f32 %v946_v14, %v946_v14  ;;  %v1101_v33 = vsub.f32 %v2590_v5, %v2651_v18 }
 0x200   : > { %v2673_v63 = vpop.permute.xlu1 %1097  ;;  %v1189_v12 = vmul.f32 %v1187_v8, %v1187_v8  ;;  %v937_v2 = vadd.f32 %v935_v40, %v921_v26  ;;  %v2679_v7 = vadd.f32 %v1190_v29, %v1184_v47  ;;  %v922_v6 = vmul.f32 %v920_v3, %v2358_v36 }
 0x201   : > { %v1598_v61 = vpop.eup %1597  ;;  %2949 = vst [vmem:[#allocation27_spill] sm:$0xff] %v2673_v63  ;;  %v954_v4 = vpop.permute.xlu0 %953  ;;  %v936_v1 = vmul.f32 %v934_v46, %v2360_v37  ;;  %v1087_v62 = vmul.f32 %v1085_v0, %v1085_v0  ;;  %v1102_v14 = vsub.f32 %v2633_v30, %v2673_v63  ;;  %v950_v29 = vmul.f32 %v948_v48, %v2374_v50 }
 0x202   : > { %v842_v32 = vmul.f32 %v1598_v61, %v841_v58  ;;  %v959_v59 = vsub.f32 %v2676_v60, %v954_v4  ;;  %v951_v35 = vadd.f32 %v949_v44, %v937_v2  ;;  %v1103_v3 = vmul.f32 %v1101_v33, %v1101_v33 }
 0x203   : > { %v1086_v61 = vsub.f32 %v2628_v38, %v2649_v25  ;;  %v938_v33 = vadd.f32 %v936_v1, %v922_v6  ;;  %v1104_v2 = vmul.f32 %v1102_v14, %v1102_v14 }
 0x204   : > { %v2685_v23 = vsel %vm2506_vm8, %v842_v32, 0.0  ;;  %v961_v8 = vmul.f32 %v959_v59, %v959_v59  ;;  %v956_v46 = vpop.permute.xlu1 %955 }
 0x205   : > { %v846_v40 = vmul.f32 %v2685_v23, %v2467_v45  ;;  %v848_v47 = vmul.f32 %v2685_v23, %v2485_v21  ;;  %v1112_v0 = vpop.permute.xlu0 %1111  ;;  %v1600_v26 = vpop.eup %1599  ;;  %v960_v4 = vsub.f32 %v2655_v16, %v956_v46  ;;  %v1089_v46 = vmul.f32 %v1087_v62, %v2358_v36 }
 0x206   : > { %v963_v44 = vmul.f32 %v961_v8, %v2377_v55  ;;  %v1117_v32 = vsub.f32 %v2611_v39, %v1112_v0  ;;  %v843_v48 = vmul.f32 %v1600_v26, %v841_v58  ;;  %v952_v8 = vadd.f32 %v950_v29, %v938_v33 }
 0x207   : > { %v2700_v45 = vadd.f32 %v846_v40, %v2604_v20  ;;  %v2703_v21 = vadd.f32 %v848_v47, %v2606_v9  ;;  %v962_v52 = vmul.f32 %v960_v4, %v960_v4  ;;  %v1105_v0 = vmul.f32 %v1103_v3, %v2360_v37 }
 0x208   : > { %v965_v59 = vadd.f32 %v963_v44, %v951_v35  ;;  %v1119_v63 = vmul.f32 %v1117_v32, %v1117_v32  ;;  %v2707_v18 = vsel %vm2506_vm8, %v843_v48, 0.0  ;;  %v1114_v20 = vpop.permute.xlu1 %1113  ;;  %v1602_v11 = vpop.eup %1601  ;;  %v1088_v6 = vmul.f32 %v1086_v61, %v1086_v61 }
 0x209   : > { %v1128_v40 = vpop.permute.xlu0 %1127  ;;  %v847_v9 = vmul.f32 %v2707_v18, %v2483_v31  ;;  %v849_v58 = vmul.f32 %v2707_v18, %v2499_v24  ;;  %v964_v35 = vmul.f32 %v962_v52, %v2377_v55  ;;  %v1118_v47 = vsub.f32 %v2646_v49, %v1114_v20 }
 0x20a   : > { %v967_v1 = vmul.f32 1.442695, %v965_v59  ;;  %v1121_v14 = vmul.f32 %v1119_v63, %v2374_v50  ;;  %v1133_v62 = vsub.f32 %v2676_v60, %v1128_v40  ;;  %v1106_v31 = vmul.f32 %v1104_v2, %v2360_v37 }
 0x20b   : > { %v2720_v29 = vadd.f32 %v847_v9, %v2623_v22  ;;  %v2723_v3 = vadd.f32 %v849_v58, %v2625_v43  ;;  %v1604_v24 = vpop.eup %1603  ;;  %v1107_v26 = vadd.f32 %v1105_v0, %v1089_v46  ;;  %v966_v61 = vadd.f32 %v964_v35, %v952_v8 }
 0x20c   : > { %1605 = vpow2.f32 %v967_v1  ;;  %v1120_v52 = vmul.f32 %v1118_v47, %v1118_v47  ;;  %v1135_v44 = vmul.f32 %v1133_v62, %v1133_v62  ;;  %v1130_v63 = vpop.permute.xlu1 %1129  ;;  %v1185_v32 = vadd.f32 %v2669_v17, %v2666_v27 }
 0x20d   : > { %v2726_v4 = vpop.permute.xlu0 %1215  ;;  %v1191_v22 = vmul.f32 %v1189_v12, %v2377_v55  ;;  %v1090_v43 = vmul.f32 %v1088_v6, %v2358_v36  ;;  %v1134_v48 = vsub.f32 %v2655_v16, %v1130_v63  ;;  %v969_v33 = vmul.f32 1.442695, %v966_v61 }
 0x20e   : > { %v1123_v2 = vadd.f32 %v1121_v14, %v1107_v26  ;;  %v1122_v59 = vmul.f32 %v1120_v52, %v2374_v50  ;;  %v1137_v8 = vmul.f32 %v1135_v44, %v2377_v55  ;;  %v2950_v46 = vstv %s2602_s14 }
 0x20f   : > { %v895_v0 = vmul.f32 %v1602_v11, %v2950_v46  ;;  %v1194_v20 = vmul.f32 1.442695, %v2679_v7  ;;  %v1108_v27 = vadd.f32 %v1106_v31, %v1090_v43  ;;  %v1136_v17 = vmul.f32 %v1134_v48, %v1134_v48 }
 0x210   : > { %1607 = vpow2.f32 %v969_v33  ;;  %v1139_v12 = vadd.f32 %v1137_v8, %v1123_v2  ;;  %v1221_v40 = vsub.f32 %v2585_v54, %v2726_v4  ;;  %v2742_v9 = vpop.permute.xlu1 %1217  ;;  %v2951_v6 = vmov %v2950_v46  ;;  %v2952_v8 = vld [vmem:[#allocation19_spill] sm:$0xff] }
 0x211   : > { %v2744_v58 = vpop.permute.xlu0 %1229  ;;  %v896_v1 = vmul.f32 %v1604_v24, %v2951_v6  ;;  %v1124_v35 = vadd.f32 %v1122_v59, %v1108_v27  ;;  %v1138_v14 = vmul.f32 %v1136_v17, %v2377_v55  ;;  %v1193_v7 = vadd.f32 %v1191_v22, %v1185_v32 }
 0x212   : > { %v1235_v11 = vsub.f32 %v2590_v5, %v2744_v58  ;;  %v1141_v47 = vmul.f32 1.442695, %v1139_v12  ;;  %1609 = vpow2.f32 %v1194_v20  ;;  %v2753_v62 = vsel %vm384_vm6, %v895_v0, 0.0 }
 0x213   : > { %v1140_v54 = vadd.f32 %v1138_v14, %v1124_v35  ;;  %v1223_v26 = vmul.f32 %v1221_v40, %v1221_v40  ;;  %v2759_v52 = vsel %vm384_vm6, %v896_v1, 0.0  ;;  %v1222_v5 = vsub.f32 %v2628_v38, %v2742_v9  ;;  %v2953_v40 = vld [vmem:[#allocation20_spill] sm:$0xff] }
 0x214   : > { %v1237_v31 = vmul.f32 %v1235_v11, %v1235_v11  ;;  %1611 = vpow2.f32 %v1141_v47  ;;  %v2755_v61 = vpop.permute.xlu1 %1231  ;;  %v971_v32 = vstv %s2733_s22  ;;  %v899_v22 = vmul.f32 %v2753_v62, %v2084_v34 }
 0x215   : > { %v1244_v24 = vpop.permute.xlu0 %1243  ;;  %v1143_v44 = vmul.f32 1.442695, %v1140_v54  ;;  %v1236_v63 = vsub.f32 %v2633_v30, %v2755_v61  ;;  %v373_v43 = vadd.s32 8, %v2461_v19  ;;  %v1196_v33 = vmul.f32 1.442695, %v1193_v7 }
 0x216   : > { %v1249_v48 = vsub.f32 %v2611_v39, %v1244_v24  ;;  %v901_v2 = vmul.f32 %v2753_v62, %v2098_v41  ;;  %v1239_v38 = vmul.f32 %v1237_v31, %v2360_v37  ;;  %v900_v30 = vmul.f32 %v2759_v52, %v2952_v8 }
 0x217   : > { %1613 = vpow2.f32 %v1143_v44  ;;  %v1225_v46 = vmul.f32 %v1223_v26, %v2358_v36  ;;  %v1238_v34 = vmul.f32 %v1236_v63, %v1236_v63  ;;  %v1224_v27 = vmul.f32 %v1222_v5, %v1222_v5 }
 0x218   : > { %v1251_v0 = vmul.f32 %v1249_v48, %v1249_v48  ;;  %v1246_v19 = vpop.permute.xlu1 %1245  ;;  %v903_v12 = vadd.f32 %v899_v22, %v2700_v45  ;;  %v902_v6 = vmul.f32 %v2759_v52, %v2953_v40  ;;  %v2783_v1 = vadd.s32 1, %v373_v43 }
 0x219   : > { %v1606_v59 = vpop.eup %1605  ;;  %v1258_v20 = vpop.permute.xlu0 %1257  ;;  %v1250_v17 = vsub.f32 %v2646_v49, %v1246_v19  ;;  %v1241_v11 = vadd.f32 %v1239_v38, %v1225_v46  ;;  %v905_v49 = vadd.f32 %v901_v2, %v2703_v21  ;;  %v1240_v54 = vmul.f32 %v1238_v34, %v2360_v37 }
 0x21a   : > { %v972_v39 = vmul.f32 %v1606_v59, %v971_v32  ;;  %v1263_v41 = vsub.f32 %v2676_v60, %v1258_v20  ;;  %v1253_v35 = vmul.f32 %v1251_v0, %v2374_v50  ;;  %v1226_v24 = vmul.f32 %v1224_v27, %v2358_v36 }
 0x21b   : > { %v1252_v7 = vmul.f32 %v1250_v17, %v1250_v17  ;;  %1615 = vpow2.f32 %v1196_v33  ;;  %v904_v36 = vadd.f32 %v900_v30, %v2720_v29  ;;  %vm991_vm13 = vcmp.lt.s32.totalorder %v2783_v1, 16 }
 0x21c   : > { %v974_v14 = vsel %vm388_vm11, %v972_v39, 0.0  ;;  %v1265_v47 = vmul.f32 %v1263_v41, %v1263_v41  ;;  %v1260_v31 = vpop.permute.xlu1 %1259  ;;  %v1255_v44 = vadd.f32 %v1253_v35, %v1241_v11  ;;  %vm1076_vm14 = vmand %vm991_vm13, %vm2506_vm8  ;;  %v854_v39 = vadd.f32 %v2685_v23, %v2598_v53  ;;  %v2954_v35 = vld [vmem:[#allocation25_spill] sm:$0xff] }
 0x21d   : > { %v976_v60 = vmul.f32 %v974_v14, %v2552_v57  ;;  %v978_v45 = vmul.f32 %v974_v14, %v2573_v56  ;;  %v1608_v26 = vpop.eup %1607  ;;  %v1264_v63 = vsub.f32 %v2655_v16, %v1260_v31  ;;  %v1254_v21 = vmul.f32 %v1252_v7, %v2374_v50  ;;  %vm1161_vm15 = vmand %vm991_vm13, %vm384_vm6 }
 0x21e   : > { %v1267_v5 = vmul.f32 %v1265_v47, %v2377_v55  ;;  %v973_v48 = vmul.f32 %v1608_v26, %v971_v32  ;;  %v1145_v57 = vstv %s2772_s10  ;;  %v1242_v16 = vadd.f32 %v1240_v54, %v1226_v24  ;;  %vm1214_vm0 = vmand %vm991_vm13, %vm388_vm11 }
 0x21f   : > { %v980_v22 = vadd.f32 %v976_v60, %v903_v12  ;;  %v2795_v43 = vadd.f32 %v978_v45, %v905_v49  ;;  %v1266_v2 = vmul.f32 %v1264_v63, %v1264_v63  ;;  %v1610_v37 = vpop.eup %1609  ;;  %v906_v32 = vadd.f32 %v902_v6, %v2723_v3 }
 0x220   : > { %v1269_v56 = vadd.f32 %v1267_v5, %v1255_v44  ;;  %v975_v38 = vsel %vm388_vm11, %v973_v48, 0.0  ;;  %v1256_v34 = vadd.f32 %v1254_v21, %v1242_v16  ;;  %v1198_v41 = vstv %s2799_s1  ;;  %v2955_v44 = vld [vmem:[#allocation26_spill] sm:$0xff]  ;;  %v2956_v21 = vld [vmem:[#allocation21_spill] sm:$0xff] }
 0x221   : > { %v1612_v59 = vpop.eup %1611  ;;  %v977_v50 = vmul.f32 %v975_v38, %v2571_v51  ;;  %v979_v33 = vmul.f32 %v975_v38, %v2594_v15  ;;  %v1268_v0 = vmul.f32 %v1266_v2, %v2377_v55  ;;  %v907_v42 = vadd.f32 %v2753_v62, %v854_v39 }
 0x222   : > { %v1271_v8 = vmul.f32 1.442695, %v1269_v56  ;;  %v1146_v46 = vmul.f32 %v1612_v59, %v1145_v57  ;;  %v1199_v6 = vmul.f32 %v1610_v37, %v1198_v41  ;;  %v855_v11 = vadd.f32 %v2707_v18, %v2954_v35  ;;  %v2957_v56 = vld [vmem:[#allocation23_spill] sm:$0xff] }
 0x223   : > { %v981_v29 = vadd.f32 %v977_v50, %v904_v36  ;;  %v983_v30 = vadd.f32 %v979_v33, %v906_v32  ;;  %v1270_v51 = vadd.f32 %v1268_v0, %v1256_v34  ;;  %v984_v7 = vadd.f32 %v974_v14, %v907_v42  ;;  %v2958_v37 = vld [vmem:[#allocation27_spill] sm:$0xff]  ;;  %v2959_v32 = vld [vmem:[#allocation22_spill] sm:$0xff]  ;;  %v2960_v33 = vld [vmem:[#allocation24_spill] sm:$0xff] }
 0x224   : > { %1617 = vpow2.f32 %v1271_v8  ;;  %v1614_v19 = vpop.eup %1613  ;;  %v1148_v20 = vsel %vm2506_vm8, %v1146_v46, 0.0  ;;  %v1275_v49 = vstv %s1481_s2  ;;  %v908_v53 = vadd.f32 %v2759_v52, %v855_v11 }
 0x225   : > { %v1150_v15 = vmul.f32 %v1148_v20, %v2618_v13  ;;  %v1147_v3 = vmul.f32 %v1614_v19, %v1145_v57  ;;  %v1273_v55 = vmul.f32 1.442695, %v1270_v51  ;;  %v1158_v47 = vadd.f32 %v1148_v20, %v984_v7 }
 0x226   : > { %v1201_v23 = vsel %vm384_vm6, %v1199_v6, 0.0  ;;  %v1152_v5 = vmul.f32 %v1148_v20, %v2955_v44 }
 0x227   : > { %v1154_v27 = vadd.f32 %v1150_v15, %v980_v22  ;;  %v1149_v17 = vsel %vm1076_vm14, %v1147_v3, 0.0  ;;  %1619 = vpow2.f32 %v1273_v55  ;;  %v1211_v54 = vadd.f32 %v1201_v23, %v1158_v47 }
 0x228   : > { %v1151_v12 = vmul.f32 %v1149_v17, %v2649_v25  ;;  %v1616_v13 = vpop.eup %1615  ;;  %v985_v25 = vadd.f32 %v975_v38, %v908_v53  ;;  %v1156_v48 = vadd.f32 %v1152_v5, %v2795_v43  ;;  %v1203_v57 = vmul.f32 %v1201_v23, %v2956_v21 }
 0x229   : > { %v1200_v45 = vmul.f32 %v1616_v13, %v1198_v41  ;;  %v1205_v2 = vmul.f32 %v1201_v23, %v2957_v56  ;;  %v1153_v36 = vmul.f32 %v1149_v17, %v2958_v37 }
 0x22a   : > { %v1155_v40 = vadd.f32 %v1151_v12, %v981_v29  ;;  %v1159_v18 = vadd.f32 %v1149_v17, %v985_v25  ;;  %v1207_v38 = vadd.f32 %v1203_v57, %v1154_v27 }
 0x22b   : > { %v1202_v26 = vsel %vm1161_vm15, %v1200_v45, 0.0  ;;  %v1209_v16 = vadd.f32 %v1205_v2, %v1156_v48  ;;  %v1157_v59 = vadd.f32 %v1153_v36, %v983_v30 }
 0x22c   : > { %v1212_v28 = vadd.f32 %v1202_v26, %v1159_v18  ;;  %v1204_v50 = vmul.f32 %v1202_v26, %v2959_v32  ;;  %v1206_v8 = vmul.f32 %v1202_v26, %v2960_v33 }
 0x22e   : > { %v1210_v20 = vadd.f32 %v1206_v8, %v1157_v59 }
 0x231   : > { %v1618_v60 = vpop.eup %1617 }
 0x232   : > { %v1276_v62 = vmul.f32 %v1618_v60, %v1275_v49 }
 0x234   : > { %v1278_v14 = vsel %vm388_vm11, %v1276_v62, 0.0  ;;  %v1620_v52 = vpop.eup %1619 }
 0x235   : > { %v1288_v31 = vadd.f32 %v1278_v14, %v1211_v54  ;;  %v1277_v24 = vmul.f32 %v1620_v52, %v1275_v49  ;;  %v1280_v10 = vmul.f32 %v1278_v14, %v2726_v4  ;;  %v1282_v1 = vmul.f32 %v1278_v14, %v2744_v58 }
 0x236   : > { %v1208_v58 = vadd.f32 %v1204_v50, %v1155_v40 }
 0x237   : > { %1621 = vrcp.f32 %v1288_v31  ;;  %v1279_v63 = vsel %vm1214_vm0, %v1277_v24, 0.0  ;;  %v1284_v43 = vadd.f32 %v1280_v10, %v1207_v38  ;;  %v1286_v46 = vadd.f32 %v1282_v1, %v1209_v16 }
 0x238   : > { %v1289_v22 = vadd.f32 %v1279_v63, %v1212_v28  ;;  %v1281_v0 = vmul.f32 %v1279_v63, %v2742_v9  ;;  %v1283_v29 = vmul.f32 %v1279_v63, %v2755_v61 }
 0x23a   : > { %1623 = vrcp.f32 %v1289_v22  ;;  %v1285_v30 = vadd.f32 %v1281_v0, %v1208_v58  ;;  %v1287_v51 = vadd.f32 %v1283_v29, %v1210_v20 }
 0x244   : > { %v1622_v34 = vpop.eup %1621 }
 0x245   : > { %v1292_v4 = vmul.f32 %v1622_v34, %v1284_v43  ;;  %v1294_v19 = vmul.f32 %v1622_v34, %v1286_v46 }
 0x247   : > { %1297 = vst.msk [vmem:[%s301_s6] sm:$0xff] %vm1296_vm1, %v1292_v4  ;;  %1299 = vst.msk [vmem:[%s301_s6 + $0x10] sm:$0xff] %vm1296_vm1, %v1294_v19  ;;  %v1624_v9 = vpop.eup %1623 }
 0x248   : > { %v1293_v61 = vmul.f32 %v1624_v9, %v1285_v30  ;;  %v1295_v15 = vmul.f32 %v1624_v9, %v1287_v51 }
 0x24a   : > { %1298 = vst.msk [vmem:[%s301_s6 + $0x8] sm:$0xff] %vm1296_vm1, %v1293_v61  ;;  %1300 = vst.msk [vmem:[%s301_s6 + $0x18] sm:$0xff] %vm1296_vm1, %v1295_v15 }
 0x24b   : > { %1728 = shalt.err (!%p1725_p0)
}
 0x24c   : > { %s1729_s21 = scalar_lea.hbm %s2855_s12, 512  ;;  %s1733_s29 = scalar_lea.hbm %s2911_s4, 1024 }
 0x24d   : > { %p1730_p9 = scmp.ne.s32.totalorder %s2855_s12, %s1729_s21  ;;  %p1734_p5 = scmp.lt.s32.totalorder %s2855_s12, %s2911_s4 }
 0x24e   : > { %p1735_p6 = scmp.lt.s32.totalorder %s1733_s29, %s1729_s21 }
 0x24f   : > { %p1731_p2 = pnand %p1730_p9, %p2961_p7 }
 0x250   : > { %p1736_p10 = por %p1735_p6, %p1734_p5 }
 0x251   : > { %p1732_p8 = pneg %p1731_p2 }
 0x253   : > { %p1737_p3 = pnand %p1736_p10, %p1732_p8 }
 0x255   : > { %1740 = shalt.err (!%p1737_p3)
}
 0x256   : > { %s1819_s22 = smov 128   ;;  %s1820_s10 = smov 8  }
 0x257   : > { %1502 = dma.vmem_to_hbm [thread:$0]  (%p2961_p7), %s2857_s8, 512, %s2855_s12, %s1302_s18, %s1819_s22, %s1819_s22, %s1820_s10  }
 0x258 PF: > { %s1332_s1 = sand.u32 1, %s1787_s15   ;;  %p2962_p13 = scmp.ne.s32.totalorder %s2928_s27, 0 }
 0x259   : > { %p2963_p4 = scmp.ge.s32.totalorder %s1807_s20, 2  ;;  %s1333_s2 = scalar_lea.sflag [#allocation4], %s1332_s1 }
 0x25b   : > { %p1519_p12 = pnand %p2963_p4, %p2962_p13 }
 0x25d   : > { %p1520_p11 = pneg %p1519_p12 }
 0x25f   : > { %1782 = dma.done.wait (%p1520_p11), %s1333_s2, 512  }
 0x260   : > { %1784 = vsyncadd (%p1520_p11), %s1333_s2, 4294966784  ;;  %s25_s20 = sadd.s32 1, %s1807_s20   ;;  %s2964_s26 = sld [smem:[#allocation18_spill]] }
 0x261   : > { %p22_p1 = scmp.ge.s32.totalorder %s25_s20, 4   ;;  %s2965_s0 = sld [smem:[#allocation17_spill]] }
 0x262   : > { %s2966_s15 = smov %s1791_s16  ;;  %s2967_s16 = smov %s1795_s17 }
 0x263   : > { %s2969_s18 = smov %s1803_s19  ;;  %24 = sbr.rel (!%p22_p1) target bundleno = 14 (0xe), region = 104 }
 0x266   : > { %s2968_s17 = smov %s2964_s26 }
 0x267   : > { %s2970_s19 = smov %s2965_s0 }
 0x268   :  { %1338 = vsyncpa [#allocation3], 1 }
 0x269   :  { %1340 = vsyncpa [#allocation3 + $0x1], 1 }
 0x26a   :  { %1341 = vsyncpa [#allocation10], 1 }
 0x26b   :  { %1343 = vsyncpa [#allocation10 + $0x1], 1 }
 0x26c   :  { %1344 = vsyncpa [#allocation4], 1 }
 0x26d   :  { %1346 = vsyncpa [#allocation4 + $0x1], 1 }
 0x26e   :  { %1347 = vsyncpa [#allocation5], 1 }
 0x26f   :  { %1349 = vsyncpa [#allocation5 + $0x1], 1 }
 0x270   :  { %1350 = vsyncpa [#allocation6], 1 }
 0x271   :  { %1352 = vsyncpa [#allocation6 + $0x1], 1 }

</bundles_post_ra>
